<compile_context>
chip_gen: v7x
topology: tpu7x:2x2x1
jax: 0.10.0
libtpu: 0.0.40
codegen_flags: <defaults>
</compile_context>

<pallas_src>
import functools

import jax
import jax.numpy as jnp
from jax import lax
from jax.experimental import pallas as pl
from jax.experimental.pallas import tpu as pltpu


def _round_up(x, m):
    return (x + m - 1) // m * m


# ---------------------------------------------------------------------------
# Fused Pallas kernel (one grid step == one batch image)
# ---------------------------------------------------------------------------
def _resblock_kernel(ho, wo, cin, cp,
                     pee_ref, peo_ref, poe_ref, poo_ref,
                     w1_ref, w2c_ref, b1_ref, bs_ref,
                     o_ref, h1p_ref):
    """Fused ResBlock forward for one image.

    pXX_ref : (1, ho+1, wo+1, cin) bf16   polyphase components of pad(x, 1)
    w1_ref  : (9*cin, cp)          bf16   conv1 weight, tap-major im2col rows
    w2c_ref : (9*cp + cin, cp)     bf16   [conv2 (*bn_x) ; 1x1 downsample (*bn_y)]
    b1_ref  : (1, cp)              f32    conv1 bias
    bs_ref  : (1, cp)              f32    b2*bn_x + bd*bn_y (pre-summed)
    o_ref   : (1, ho, wo, cp)      f32
    h1p_ref : (ho+2, round_up(wo+2,8), cp) bf16 scratch (padded conv2 input)
    """
    m = ho * wo
    f32 = jnp.float32
    bf16 = jnp.bfloat16
    wop = h1p_ref.shape[1]

    ee = pee_ref[0]
    eo = peo_ref[0]
    oe = poe_ref[0]
    oo = poo_ref[0]

    def win(arr, di, dj):
        # Shifted (ho, wo, cin) window; already bf16 (cast done in the wrapper).
        return arr[di:di + ho, dj:dj + wo, :]

    # (kh, kw) row-major taps of conv1, from
    #   out1[i, j] = sum_{kh,kw} xpad[2i+kh, 2j+kw] @ W1[kh, kw]   (xpad = pad(x,1))
    # The centre tap (1,1) is built once and reused for the 1x1/stride-2 branch.
    centre = win(oo, 0, 0)
    taps = (win(ee, 0, 0), win(eo, 0, 0), win(ee, 0, 1),
            win(oe, 0, 0), centre,        win(oe, 0, 1),
            win(ee, 1, 0), win(eo, 1, 0), win(ee, 1, 1))

    # ---- conv1: 3x3 stride-2 pad-1 as ONE MXU GEMM (K = 9*cin) + bias + ReLU
    lhs1 = jnp.concatenate(taps, axis=-1).reshape(m, 9 * cin)
    out1 = jnp.dot(lhs1, w1_ref[...], preferred_element_type=f32) + b1_ref[...]
    out1 = jnp.maximum(out1, 0.0).astype(bf16)      # bf16 once; conv2 path stays bf16

    # ---- zero-padded conv2 input in a persistent sublane-aligned bf16 scratch
    # Only the border needs zeroing (4 tiny stores); the interior is fully
    # overwritten every grid step, so this is safe under "parallel" semantics.
    zrow = jnp.zeros((1, wop, cp), bf16)
    h1p_ref[0:1, :, :] = zrow
    h1p_ref[ho + 1:ho + 2, :, :] = zrow
    zcol = jnp.zeros((ho, 1, cp), bf16)
    h1p_ref[1:ho + 1, 0:1, :] = zcol
    h1p_ref[1:ho + 1, wo + 1:wo + 2, :] = zcol
    h1p_ref[1:ho + 1, 1:wo + 1, :] = out1.reshape(ho, wo, cp)

    # ---- conv2 (3x3 stride-1 pad-1, bn_x folded) + 1x1 downsample (bn_y
    # folded) + residual, fused into ONE MXU GEMM with K = 9*cp + cin.
    wins = [h1p_ref[kh:kh + ho, kw:kw + wo, :]
            for kh in range(3) for kw in range(3)]
    lhs2 = jnp.concatenate(wins + [centre], axis=-1).reshape(m, 9 * cp + cin)
    acc = jnp.dot(lhs2, w2c_ref[...], preferred_element_type=f32) + bs_ref[...]

    # ---- final ReLU ----------------------------------------------------------
    o_ref[0] = jnp.maximum(acc, 0.0).reshape(ho, wo, cp).astype(o_ref.dtype)


# ---------------------------------------------------------------------------
# Wrapper-side data prep (plain JAX; single pass over x, one-time weight pack)
# ---------------------------------------------------------------------------
def _polyphase(x_nhwc):
    """Split pad(x, 1) into its 4 stride-2 polyphase components (bf16 in = bf16
    out).  Every 3x3/stride-2 tap of pad(x,1) becomes a contiguous (ho, wo)
    window of one component -> no strided/padded loads in the kernel and no
    9x im2col inflation in HBM."""
    xp = jnp.pad(x_nhwc, ((0, 0), (1, 1), (1, 1), (0, 0)))
    return (xp[:, 0::2, 0::2, :], xp[:, 0::2, 1::2, :],
            xp[:, 1::2, 0::2, :], xp[:, 1::2, 1::2, :])


def _pack_params(params, cp):
    """Fold bn into weights/biases, repack for single-GEMM im2col, pad Cout->cp,
    cast weights to bf16 (biases stay f32)."""
    w1 = params["w1"]                              # (planes, cin, 3, 3)
    planes, cin = w1.shape[0], w1.shape[1]
    pad_o = cp - planes

    # conv1: (O, I, 3, 3) -> (9*cin, cp), rows tap-major then input-channel.
    w1p = jnp.transpose(w1, (2, 3, 1, 0)).reshape(9 * cin, planes)
    w1p = jnp.pad(w1p, ((0, 0), (0, pad_o))).astype(jnp.bfloat16)
    b1p = jnp.pad(params["b1"], (0, pad_o)).reshape(1, cp).astype(jnp.float32)

    # conv2 with bn_x folded: (O, I, 3, 3) -> (9*cp, cp), same row ordering.
    w2 = params["w2"] * params["bn_x"][:, None, None, None]
    w2p = jnp.transpose(w2, (2, 3, 1, 0)).reshape(9, planes, planes)
    w2p = jnp.pad(w2p, ((0, 0), (0, pad_o), (0, pad_o))).reshape(9 * cp, cp)

    # 1x1 downsample with bn_y folded: appended as the trailing K rows of the
    # combined conv2/identity RHS (its LHS columns are the conv1 centre tap).
    wd = params["wd"][:, :, 0, 0] * params["bn_y"][:, None]   # (planes, cin)
    wdp = jnp.pad(wd.T, ((0, 0), (0, pad_o)))                 # (cin, cp)
    w2cp = jnp.concatenate([w2p, wdp], axis=0).astype(jnp.bfloat16)

    # Combined bias of the fused GEMM: b2*bn_x + bd*bn_y.
    bsum = params["b2"] * params["bn_x"] + params["bd"] * params["bn_y"]
    bsp = jnp.pad(bsum, (0, pad_o)).reshape(1, cp).astype(jnp.float32)

    return w1p, w2cp, b1p, bsp


def resblock_forward(x_nchw, params):
    """x: (N, Cin, H, W) f32 -> (N, planes, H//2, W//2) f32."""
    n, cin, h, w = x_nchw.shape
    planes = params["w1"].shape[0]
    assert h % 2 == 0 and w % 2 == 0, "even spatial dims expected (stride 2)"
    ho, wo = h // 2, w // 2
    cp = _round_up(planes, 128)            # lane-dense channel padding
    wop = _round_up(wo + 2, 8)             # sublane-aligned padded width
    m = ho * wo

    # NCHW -> NHWC and bf16 cast fused into the single polyphase pass over x.
    x = jnp.transpose(x_nchw, (0, 2, 3, 1)).astype(jnp.bfloat16)
    pee, peo, poe, poo = _polyphase(x)
    w1p, w2cp, b1p, bsp = _pack_params(params, cp)

    kern = functools.partial(_resblock_kernel, ho, wo, cin, cp)

    poly_spec = pl.BlockSpec((1, ho + 1, wo + 1, cin), lambda b: (b, 0, 0, 0))
    w1_spec = pl.BlockSpec((9 * cin, cp), lambda b: (0, 0))
    w2_spec = pl.BlockSpec((9 * cp + cin, cp), lambda b: (0, 0))
    b_spec = pl.BlockSpec((1, cp), lambda b: (0, 0))

    # VMEM budget from the actual per-step footprint (double-buffered blocks +
    # weights + scratch + live GEMM operands), with floor/cap headroom.  On
    # v7x the 64 MiB physical VMEM is the real bound; the cap only engages for
    # footprints that would not fit there anyway.
    bf, f4 = 2, 4
    poly_b = 4 * (ho + 1) * (wo + 1) * cin * bf
    wgt_b = (9 * cin * cp + (9 * cp + cin) * cp) * bf + 2 * cp * f4
    out_b = ho * wo * cp * f4
    scratch_b = (ho + 2) * wop * cp * bf
    live_b = m * 9 * cin * bf + m * (9 * cp + cin) * bf + 2 * m * cp * f4
    footprint = 2 * (poly_b + wgt_b + out_b) + scratch_b + live_b
    vmem_limit = int(min(max(2 * footprint, 32 * 1024 * 1024),
                         96 * 1024 * 1024))

    out_padded = pl.pallas_call(
        kern,
        out_shape=jax.ShapeDtypeStruct((n, ho, wo, cp), jnp.float32),
        grid=(n,),
        in_specs=[poly_spec, poly_spec, poly_spec, poly_spec,
                  w1_spec,            # w1  (9*cin, cp)
                  w2_spec,            # [w2*bn_x ; wd*bn_y]  (9*cp+cin, cp)
                  b_spec,             # b1
                  b_spec],            # b2*bn_x + bd*bn_y
        out_specs=pl.BlockSpec((1, ho, wo, cp), lambda b: (b, 0, 0, 0)),
        scratch_shapes=[pltpu.VMEM((ho + 2, wop, cp), jnp.bfloat16)],
        compiler_params=pltpu.CompilerParams(
            dimension_semantics=("parallel",),
            vmem_limit_bytes=vmem_limit),
    )(pee, peo, poe, poo, w1p, w2cp, b1p, bsp)

    out = out_padded[..., :planes]                             # drop lane pad
    return jnp.transpose(out, (0, 3, 1, 2))                    # NHWC -> NCHW


# ---------------------------------------------------------------------------
# Deterministic parameter initialization (synthetic; no checkpoint loading)
# ---------------------------------------------------------------------------
def init_params(key, inplanes, planes):
    ks = jax.random.split(key, 8)
    s = 0.1
    return {
        "w1": s * jax.random.normal(ks[0], (planes, inplanes, 3, 3), jnp.float32),
        "b1": s * jax.random.normal(ks[1], (planes,), jnp.float32),
        "wd": s * jax.random.normal(ks[2], (planes, inplanes, 1, 1), jnp.float32),
        "bd": s * jax.random.normal(ks[3], (planes,), jnp.float32),
        "w2": s * jax.random.normal(ks[4], (planes, planes, 3, 3), jnp.float32),
        "b2": s * jax.random.normal(ks[5], (planes,), jnp.float32),
        # bn_bag_quant is empty in the source; bn_x / bn_y are modeled as
        # deterministic per-output-channel scales broadcast over (N, H, W).
        "bn_x": 1.0 + 0.05 * jax.random.normal(ks[6], (planes,), jnp.float32),
        "bn_y": 1.0 + 0.05 * jax.random.normal(ks[7], (planes,), jnp.float32),
    }


# ---------------------------------------------------------------------------
# References (lax.conv) for correctness checks
# ---------------------------------------------------------------------------
def _conv(x, w, b, stride, pad, dn):
    y = lax.conv_general_dilated(
        x, w, window_strides=(stride, stride),
        padding=((pad, pad), (pad, pad)), dimension_numbers=dn,
        precision=lax.Precision.HIGHEST)
    return y + b.reshape(1, -1, 1, 1)


def _reference_f32(x, p):
    """Exact PyTorch ResBlock forward in f32 (the module spec)."""
    dn = lax.conv_dimension_numbers(x.shape, p["w1"].shape,
                                    ("NCHW", "OIHW", "NCHW"))
    out = jnp.maximum(_conv(x, p["w1"], p["b1"], 2, 1, dn), 0.0)
    identity = _conv(x, p["wd"], p["bd"], 2, 0, dn)
    out = _conv(out, p["w2"], p["b2"], 1, 1, dn)
    out = (out * p["bn_x"].reshape(1, -1, 1, 1)
           + identity * p["bn_y"].reshape(1, -1, 1, 1))
    return jnp.maximum(out, 0.0)


def _rt_bf16(a):
    return a.astype(jnp.bfloat16).astype(jnp.float32)


def _reference_bf16(x, p):
    """Same math, with operands rounded to bf16 exactly like the kernel's MXU
    path (bn folded into weights before rounding, f32 accumulation)."""
    dn = lax.conv_dimension_numbers(x.shape, p["w1"].shape,
                                    ("NCHW", "OIHW", "NCHW"))
    xb = _rt_bf16(x)
    out1 = jnp.maximum(_conv(xb, _rt_bf16(p["w1"]), p["b1"], 2, 1, dn), 0.0)
    wdf = p["wd"] * p["bn_y"].reshape(-1, 1, 1, 1)
    identity = _conv(xb, _rt_bf16(wdf), p["bd"] * p["bn_y"], 2, 0, dn)
    w2f = p["w2"] * p["bn_x"].reshape(-1, 1, 1, 1)
    out2 = _conv(_rt_bf16(out1), _rt_bf16(w2f), p["b2"] * p["bn_x"], 1, 1, dn)
    return jnp.maximum(out2 + identity, 0.0)


if __name__ == "__main__":
    key = jax.random.PRNGKey(0)
    k_x, k_p = jax.random.split(key)

    N, CIN, H, W = 2, 4, 16, 16
    PLANES = 8

    x = jax.random.normal(k_x, (N, CIN, H, W), jnp.float32)
    params = init_params(k_p, CIN, PLANES)

    out = jax.block_until_ready(jax.jit(resblock_forward)(x, params))
    assert out.shape == (N, PLANES, H // 2, W // 2), out.shape

    # Tight check: reference that rounds operands to bf16 the same way the
    # kernel's MXU path does (f32 accumulation).  Tolerance covers accumulation
    # -order differences plus at most a bf16 ulp on the conv2 input.
    ref_bf16 = jax.block_until_ready(_reference_bf16(x, params))
    err = float(jnp.max(jnp.abs(out - ref_bf16)))
    assert err < 5e-3, f"bf16-matched reference mismatch: {err}"

    # Loose sanity check vs the pure-f32 module semantics (bf16 operand
    # rounding is the only expected difference source).
    ref_f32 = jax.block_until_ready(_reference_f32(x, params))
    err32 = float(jnp.max(jnp.abs(out - ref_f32)))
    assert err32 < 0.15, f"f32 reference deviation too large: {err32}"

    print("KERNEL_OK")
</pallas_src>

<mosaic_0001>
module attributes {stable_mosaic.version = 11 : i64} {
  func.func @_resblock_kernel(%arg0: i32, %arg1: memref<1x9x9x4xbf16, #tpu.memory_space<vmem>>, %arg2: memref<1x9x9x4xbf16, #tpu.memory_space<vmem>>, %arg3: memref<1x9x9x4xbf16, #tpu.memory_space<vmem>>, %arg4: memref<1x9x9x4xbf16, #tpu.memory_space<vmem>>, %arg5: memref<36x128xbf16, #tpu.memory_space<vmem>>, %arg6: memref<1156x128xbf16, #tpu.memory_space<vmem>>, %arg7: memref<1x128xf32, #tpu.memory_space<vmem>>, %arg8: memref<1x128xf32, #tpu.memory_space<vmem>>, %arg9: memref<1x8x8x128xf32, #tpu.memory_space<vmem>>, %arg10: memref<10x16x128xbf16, #tpu.memory_space<vmem>>) attributes {dimension_semantics = [#tpu.dimension_semantics<parallel>], iteration_bounds = array<i64: 2>, scalar_prefetch = 0 : i64, scratch_operands = 1 : i64, tpu.core_type = #tpu.core_type<tc>, window_params = [{transform_indices = @transform_0, window_bounds = array<i64: 1, 9, 9, 4>}, {transform_indices = @transform_1, window_bounds = array<i64: 1, 9, 9, 4>}, {transform_indices = @transform_2, window_bounds = array<i64: 1, 9, 9, 4>}, {transform_indices = @transform_3, window_bounds = array<i64: 1, 9, 9, 4>}, {pipeline_mode = #tpu.pipeline_mode<synchronous>, transform_indices = @transform_4, window_bounds = array<i64: 36, 128>}, {pipeline_mode = #tpu.pipeline_mode<synchronous>, transform_indices = @transform_5, window_bounds = array<i64: 1156, 128>}, {pipeline_mode = #tpu.pipeline_mode<synchronous>, transform_indices = @transform_6, window_bounds = array<i64: 1, 128>}, {pipeline_mode = #tpu.pipeline_mode<synchronous>, transform_indices = @transform_7, window_bounds = array<i64: 1, 128>}, {transform_indices = @transform_8, window_bounds = array<i64: 1, 8, 8, 128>}]} {
    %c0 = arith.constant 0 : index
    %c0_0 = arith.constant 0 : index
    %c0_1 = arith.constant 0 : index
    %c0_2 = arith.constant 0 : index
    %0 = vector.load %arg1[%c0, %c0_0, %c0_1, %c0_2] : memref<1x9x9x4xbf16, #tpu.memory_space<vmem>>, vector<1x9x9x4xbf16>
    %1 = vector.shape_cast %0 : vector<1x9x9x4xbf16> to vector<9x9x4xbf16>
    %c0_3 = arith.constant 0 : index
    %c0_4 = arith.constant 0 : index
    %c0_5 = arith.constant 0 : index
    %c0_6 = arith.constant 0 : index
    %2 = vector.load %arg2[%c0_3, %c0_4, %c0_5, %c0_6] : memref<1x9x9x4xbf16, #tpu.memory_space<vmem>>, vector<1x9x9x4xbf16>
    %3 = vector.shape_cast %2 : vector<1x9x9x4xbf16> to vector<9x9x4xbf16>
    %c0_7 = arith.constant 0 : index
    %c0_8 = arith.constant 0 : index
    %c0_9 = arith.constant 0 : index
    %c0_10 = arith.constant 0 : index
    %4 = vector.load %arg3[%c0_7, %c0_8, %c0_9, %c0_10] : memref<1x9x9x4xbf16, #tpu.memory_space<vmem>>, vector<1x9x9x4xbf16>
    %5 = vector.shape_cast %4 : vector<1x9x9x4xbf16> to vector<9x9x4xbf16>
    %c0_11 = arith.constant 0 : index
    %c0_12 = arith.constant 0 : index
    %c0_13 = arith.constant 0 : index
    %c0_14 = arith.constant 0 : index
    %6 = vector.load %arg4[%c0_11, %c0_12, %c0_13, %c0_14] : memref<1x9x9x4xbf16, #tpu.memory_space<vmem>>, vector<1x9x9x4xbf16>
    %7 = vector.shape_cast %6 : vector<1x9x9x4xbf16> to vector<9x9x4xbf16>
    %8 = vector.extract_strided_slice %7 {offsets = [0, 0, 0], sizes = [8, 8, 4], strides = [1, 1, 1]} : vector<9x9x4xbf16> to vector<8x8x4xbf16>
    %9 = vector.extract_strided_slice %1 {offsets = [0, 0, 0], sizes = [8, 8, 4], strides = [1, 1, 1]} : vector<9x9x4xbf16> to vector<8x8x4xbf16>
    %10 = vector.extract_strided_slice %3 {offsets = [0, 0, 0], sizes = [8, 8, 4], strides = [1, 1, 1]} : vector<9x9x4xbf16> to vector<8x8x4xbf16>
    %11 = vector.extract_strided_slice %1 {offsets = [0, 1, 0], sizes = [8, 8, 4], strides = [1, 1, 1]} : vector<9x9x4xbf16> to vector<8x8x4xbf16>
    %12 = vector.extract_strided_slice %5 {offsets = [0, 0, 0], sizes = [8, 8, 4], strides = [1, 1, 1]} : vector<9x9x4xbf16> to vector<8x8x4xbf16>
    %13 = vector.extract_strided_slice %5 {offsets = [0, 1, 0], sizes = [8, 8, 4], strides = [1, 1, 1]} : vector<9x9x4xbf16> to vector<8x8x4xbf16>
    %14 = vector.extract_strided_slice %1 {offsets = [1, 0, 0], sizes = [8, 8, 4], strides = [1, 1, 1]} : vector<9x9x4xbf16> to vector<8x8x4xbf16>
    %15 = vector.extract_strided_slice %3 {offsets = [1, 0, 0], sizes = [8, 8, 4], strides = [1, 1, 1]} : vector<9x9x4xbf16> to vector<8x8x4xbf16>
    %16 = vector.extract_strided_slice %1 {offsets = [1, 1, 0], sizes = [8, 8, 4], strides = [1, 1, 1]} : vector<9x9x4xbf16> to vector<8x8x4xbf16>
    %17 = tpu.concatenate %9, %10, %11, %12, %8, %13, %14, %15, %16 in 2 : vector<8x8x4xbf16>, vector<8x8x4xbf16>, vector<8x8x4xbf16>, vector<8x8x4xbf16>, vector<8x8x4xbf16>, vector<8x8x4xbf16>, vector<8x8x4xbf16>, vector<8x8x4xbf16>, vector<8x8x4xbf16> -> vector<8x8x36xbf16>
    %18 = vector.shape_cast %17 : vector<8x8x36xbf16> to vector<64x36xbf16>
    %c0_15 = arith.constant 0 : index
    %c0_16 = arith.constant 0 : index
    %19 = vector.load %arg5[%c0_15, %c0_16] : memref<36x128xbf16, #tpu.memory_space<vmem>>, vector<36x128xbf16>
    %cst = arith.constant dense<0.000000e+00> : vector<64x128xf32>
    %20 = tpu.matmul %18, %19, %cst {dimension_numbers = #tpu.dot_dimension_numbers<[1], [0], [0], [1], [0, 0, 1, 1], [], []>} : vector<64x36xbf16>, vector<36x128xbf16>, vector<64x128xf32> -> vector<64x128xf32>
    %c0_17 = arith.constant 0 : index
    %c0_18 = arith.constant 0 : index
    %21 = vector.load %arg7[%c0_17, %c0_18] : memref<1x128xf32, #tpu.memory_space<vmem>>, vector<1x128xf32>
    %22 = vector.broadcast %21 : vector<1x128xf32> to vector<64x128xf32>
    %23 = arith.addf %20, %22 : vector<64x128xf32>
    %cst_19 = arith.constant 0.000000e+00 : f32
    %24 = vector.broadcast %cst_19 : f32 to vector<64x128xf32>
    %25 = arith.maximumf %23, %24 : vector<64x128xf32>
    %26 = arith.truncf %25 : vector<64x128xf32> to vector<64x128xbf16>
    %cst_20 = arith.constant 0.000000e+00 : bf16
    %27 = vector.broadcast %cst_20 : bf16 to vector<1x16x128xbf16>
    %c0_21 = arith.constant 0 : index
    %c0_22 = arith.constant 0 : index
    %c0_23 = arith.constant 0 : index
    %28 = vector.load %arg10[%c0_21, %c0_22, %c0_23] : memref<10x16x128xbf16, #tpu.memory_space<vmem>>, vector<1x16x128xbf16>
    tpu.vector_store %arg10[%c0_21, %c0_22, %c0_23], %27 {strides = array<i32>} : memref<10x16x128xbf16, #tpu.memory_space<vmem>>, vector<1x16x128xbf16>,
    %c9 = arith.constant 9 : index
    %c0_24 = arith.constant 0 : index
    %c0_25 = arith.constant 0 : index
    %29 = vector.load %arg10[%c9, %c0_24, %c0_25] : memref<10x16x128xbf16, #tpu.memory_space<vmem>>, vector<1x16x128xbf16>
    tpu.vector_store %arg10[%c9, %c0_24, %c0_25], %27 {strides = array<i32>} : memref<10x16x128xbf16, #tpu.memory_space<vmem>>, vector<1x16x128xbf16>,
    %cst_26 = arith.constant 0.000000e+00 : bf16
    %30 = vector.broadcast %cst_26 : bf16 to vector<8x1x128xbf16>
    %c1 = arith.constant 1 : index
    %c0_27 = arith.constant 0 : index
    %c0_28 = arith.constant 0 : index
    %31 = vector.load %arg10[%c1, %c0_27, %c0_28] : memref<10x16x128xbf16, #tpu.memory_space<vmem>>, vector<8x1x128xbf16>
    tpu.vector_store %arg10[%c1, %c0_27, %c0_28], %30 {strides = array<i32>} : memref<10x16x128xbf16, #tpu.memory_space<vmem>>, vector<8x1x128xbf16>,
    %c1_29 = arith.constant 1 : index
    %c9_30 = arith.constant 9 : index
    %c0_31 = arith.constant 0 : index
    %32 = vector.load %arg10[%c1_29, %c9_30, %c0_31] : memref<10x16x128xbf16, #tpu.memory_space<vmem>>, vector<8x1x128xbf16>
    tpu.vector_store %arg10[%c1_29, %c9_30, %c0_31], %30 {strides = array<i32>} : memref<10x16x128xbf16, #tpu.memory_space<vmem>>, vector<8x1x128xbf16>,
    %33 = vector.shape_cast %26 : vector<64x128xbf16> to vector<8x8x128xbf16>
    %c1_32 = arith.constant 1 : index
    %c1_33 = arith.constant 1 : index
    %c0_34 = arith.constant 0 : index
    %34 = vector.load %arg10[%c1_32, %c1_33, %c0_34] : memref<10x16x128xbf16, #tpu.memory_space<vmem>>, vector<8x8x128xbf16>
    tpu.vector_store %arg10[%c1_32, %c1_33, %c0_34], %33 {strides = array<i32>} : memref<10x16x128xbf16, #tpu.memory_space<vmem>>, vector<8x8x128xbf16>,
    %c0_35 = arith.constant 0 : index
    %c0_36 = arith.constant 0 : index
    %c0_37 = arith.constant 0 : index
    %35 = vector.load %arg10[%c0_35, %c0_36, %c0_37] : memref<10x16x128xbf16, #tpu.memory_space<vmem>>, vector<8x8x128xbf16>
    %c0_38 = arith.constant 0 : index
    %c1_39 = arith.constant 1 : index
    %c0_40 = arith.constant 0 : index
    %36 = vector.load %arg10[%c0_38, %c1_39, %c0_40] : memref<10x16x128xbf16, #tpu.memory_space<vmem>>, vector<8x8x128xbf16>
    %c0_41 = arith.constant 0 : index
    %c2 = arith.constant 2 : index
    %c0_42 = arith.constant 0 : index
    %37 = vector.load %arg10[%c0_41, %c2, %c0_42] : memref<10x16x128xbf16, #tpu.memory_space<vmem>>, vector<8x8x128xbf16>
    %c1_43 = arith.constant 1 : index
    %c0_44 = arith.constant 0 : index
    %c0_45 = arith.constant 0 : index
    %38 = vector.load %arg10[%c1_43, %c0_44, %c0_45] : memref<10x16x128xbf16, #tpu.memory_space<vmem>>, vector<8x8x128xbf16>
    %c1_46 = arith.constant 1 : index
    %c1_47 = arith.constant 1 : index
    %c0_48 = arith.constant 0 : index
    %39 = vector.load %arg10[%c1_46, %c1_47, %c0_48] : memref<10x16x128xbf16, #tpu.memory_space<vmem>>, vector<8x8x128xbf16>
    %c1_49 = arith.constant 1 : index
    %c2_50 = arith.constant 2 : index
    %c0_51 = arith.constant 0 : index
    %40 = vector.load %arg10[%c1_49, %c2_50, %c0_51] : memref<10x16x128xbf16, #tpu.memory_space<vmem>>, vector<8x8x128xbf16>
    %c2_52 = arith.constant 2 : index
    %c0_53 = arith.constant 0 : index
    %c0_54 = arith.constant 0 : index
    %41 = vector.load %arg10[%c2_52, %c0_53, %c0_54] : memref<10x16x128xbf16, #tpu.memory_space<vmem>>, vector<8x8x128xbf16>
    %c2_55 = arith.constant 2 : index
    %c1_56 = arith.constant 1 : index
    %c0_57 = arith.constant 0 : index
    %42 = vector.load %arg10[%c2_55, %c1_56, %c0_57] : memref<10x16x128xbf16, #tpu.memory_space<vmem>>, vector<8x8x128xbf16>
    %c2_58 = arith.constant 2 : index
    %c2_59 = arith.constant 2 : index
    %c0_60 = arith.constant 0 : index
    %43 = vector.load %arg10[%c2_58, %c2_59, %c0_60] : memref<10x16x128xbf16, #tpu.memory_space<vmem>>, vector<8x8x128xbf16>
    %44 = tpu.concatenate %35, %36, %37, %38, %39, %40, %41, %42, %43, %8 in 2 : vector<8x8x128xbf16>, vector<8x8x128xbf16>, vector<8x8x128xbf16>, vector<8x8x128xbf16>, vector<8x8x128xbf16>, vector<8x8x128xbf16>, vector<8x8x128xbf16>, vector<8x8x128xbf16>, vector<8x8x128xbf16>, vector<8x8x4xbf16> -> vector<8x8x1156xbf16>
    %45 = vector.shape_cast %44 : vector<8x8x1156xbf16> to vector<64x1156xbf16>
    %c0_61 = arith.constant 0 : index
    %c0_62 = arith.constant 0 : index
    %46 = vector.load %arg6[%c0_61, %c0_62] : memref<1156x128xbf16, #tpu.memory_space<vmem>>, vector<1156x128xbf16>
    %cst_63 = arith.constant dense<0.000000e+00> : vector<64x128xf32>
    %47 = tpu.matmul %45, %46, %cst_63 {dimension_numbers = #tpu.dot_dimension_numbers<[1], [0], [0], [1], [0, 0, 1, 1], [], []>} : vector<64x1156xbf16>, vector<1156x128xbf16>, vector<64x128xf32> -> vector<64x128xf32>
    %c0_64 = arith.constant 0 : index
    %c0_65 = arith.constant 0 : index
    %48 = vector.load %arg8[%c0_64, %c0_65] : memref<1x128xf32, #tpu.memory_space<vmem>>, vector<1x128xf32>
    %49 = vector.broadcast %48 : vector<1x128xf32> to vector<64x128xf32>
    %50 = arith.addf %47, %49 : vector<64x128xf32>
    %cst_66 = arith.constant 0.000000e+00 : f32
    %51 = vector.broadcast %cst_66 : f32 to vector<64x128xf32>
    %52 = arith.maximumf %50, %51 : vector<64x128xf32>
    %53 = vector.shape_cast %52 : vector<64x128xf32> to vector<8x8x128xf32>
    %c0_67 = arith.constant 0 : index
    %c0_68 = arith.constant 0 : index
    %c0_69 = arith.constant 0 : index
    %c0_70 = arith.constant 0 : index
    %54 = vector.load %arg9[%c0_67, %c0_68, %c0_69, %c0_70] : memref<1x8x8x128xf32, #tpu.memory_space<vmem>>, vector<1x8x8x128xf32>
    %55 = vector.shape_cast %54 : vector<1x8x8x128xf32> to vector<8x8x128xf32>
    %56 = vector.shape_cast %53 : vector<8x8x128xf32> to vector<1x8x8x128xf32>
    tpu.vector_store %arg9[%c0_67, %c0_68, %c0_69, %c0_70], %56 {strides = array<i32>} : memref<1x8x8x128xf32, #tpu.memory_space<vmem>>, vector<1x8x8x128xf32>,
    return
  }
  func.func @transform_0(%arg0: i32) -> (i32, i32, i32, i32) {
    %c0_i32 = arith.constant 0 : i32
    %c0_i32_0 = arith.constant 0 : i32
    %c0_i32_1 = arith.constant 0 : i32
    %c0_i32_2 = arith.constant 0 : i32
    return %arg0, %c0_i32, %c0_i32_0, %c0_i32_1 : i32, i32, i32, i32
  }
  func.func @transform_1(%arg0: i32) -> (i32, i32, i32, i32) {
    %c0_i32 = arith.constant 0 : i32
    %c0_i32_0 = arith.constant 0 : i32
    %c0_i32_1 = arith.constant 0 : i32
    %c0_i32_2 = arith.constant 0 : i32
    return %arg0, %c0_i32, %c0_i32_0, %c0_i32_1 : i32, i32, i32, i32
  }
  func.func @transform_2(%arg0: i32) -> (i32, i32, i32, i32) {
    %c0_i32 = arith.constant 0 : i32
    %c0_i32_0 = arith.constant 0 : i32
    %c0_i32_1 = arith.constant 0 : i32
    %c0_i32_2 = arith.constant 0 : i32
    return %arg0, %c0_i32, %c0_i32_0, %c0_i32_1 : i32, i32, i32, i32
  }
  func.func @transform_3(%arg0: i32) -> (i32, i32, i32, i32) {
    %c0_i32 = arith.constant 0 : i32
    %c0_i32_0 = arith.constant 0 : i32
    %c0_i32_1 = arith.constant 0 : i32
    %c0_i32_2 = arith.constant 0 : i32
    return %arg0, %c0_i32, %c0_i32_0, %c0_i32_1 : i32, i32, i32, i32
  }
  func.func @transform_4(%arg0: i32) -> (i32, i32) {
    %c0_i32 = arith.constant 0 : i32
    %c0_i32_0 = arith.constant 0 : i32
    %c0_i32_1 = arith.constant 0 : i32
    return %c0_i32, %c0_i32_0 : i32, i32
  }
  func.func @transform_5(%arg0: i32) -> (i32, i32) {
    %c0_i32 = arith.constant 0 : i32
    %c0_i32_0 = arith.constant 0 : i32
    %c0_i32_1 = arith.constant 0 : i32
    return %c0_i32, %c0_i32_0 : i32, i32
  }
  func.func @transform_6(%arg0: i32) -> (i32, i32) {
    %c0_i32 = arith.constant 0 : i32
    %c0_i32_0 = arith.constant 0 : i32
    %c0_i32_1 = arith.constant 0 : i32
    return %c0_i32, %c0_i32_0 : i32, i32
  }
  func.func @transform_7(%arg0: i32) -> (i32, i32) {
    %c0_i32 = arith.constant 0 : i32
    %c0_i32_0 = arith.constant 0 : i32
    %c0_i32_1 = arith.constant 0 : i32
    return %c0_i32, %c0_i32_0 : i32, i32
  }
  func.func @transform_8(%arg0: i32) -> (i32, i32, i32, i32) {
    %c0_i32 = arith.constant 0 : i32
    %c0_i32_0 = arith.constant 0 : i32
    %c0_i32_1 = arith.constant 0 : i32
    %c0_i32_2 = arith.constant 0 : i32
    return %arg0, %c0_i32, %c0_i32_0, %c0_i32_1 : i32, i32, i32, i32
  }
}

</mosaic_0001>

<bundles_post_ra>
// kernel: resblock_forward.1
= control target key start
LH: loop header
LB: loop body
LE: loop exit
PB: predicated region body
PF: predicated region fallthrough
CT: control target
= control target key end

     0   :  { %s3398_s27 = smov 0   ;;  %s4130_s0 = inlined_call_operand.vmem [shape: bf16[2,9,9,4], index: 0, kind: input, shape index: {}]   ;;  %s4131_s1 = inlined_call_operand.vmem [shape: bf16[2,9,9,4], index: 1, kind: input, shape index: {}]   ;;  %s4132_s2 = inlined_call_operand.vmem [shape: bf16[2,9,9,4], index: 2, kind: input, shape index: {}]   ;;  %s4133_s3 = inlined_call_operand.vmem [shape: bf16[2,9,9,4], index: 3, kind: input, shape index: {}]   ;;  %s4134_s4 = inlined_call_operand.vmem [shape: bf16[36,128], index: 4, kind: input, shape index: {}]   ;;  %s4135_s5 = inlined_call_operand.vmem [shape: bf16[1156,128], index: 5, kind: input, shape index: {}]   ;;  %s4136_s6 = inlined_call_operand.vmem [shape: f32[1,128], index: 6, kind: input, shape index: {}]   ;;  %s4137_s7 = inlined_call_operand.vmem [shape: f32[1,128], index: 7, kind: input, shape index: {}]   ;;  %s4138_s8 = inlined_call_operand.vmem [shape: f32[2,8,8,128], index: 8, kind: output, shape index: {}]  }
   0x1 LB: > { %s2766_s28 = sadd.s32 4294967295, %s3342_s27   ;;  %p2770_p0 = scmp.ge.s32.totalorder %s3342_s27, 1  ;;  %s3342_s27 = sphi %s3398_s27, %s18_s27  }
   0x2   : > { %p292_p1 = scmp.lt.s32.totalorder %s3342_s27, 3 }
   0x4   : > { %p293_p2 = pnand %p2770_p0, %p292_p1 }
   0x5   : > { %p341_p3 = scmp.lt.s32.totalorder (!%p293_p2), %s2766_s28, 1  ;;  %s3344_s17 = smov (!%p293_p2), 4   ;;  %vm1021_vm0 = vcmask (!%p293_p2), 1041408   ;;  %vm817_vm1 = vcmask (!%p293_p2), 31744   ;;  %vm842_vm2 = vcmask (!%p293_p2), 64512   ;;  %vm859_vm3 = vcmask (!%p293_p2), 97280  }
   0x6   : > { %296 = sbr.rel (%p293_p2) target bundleno = 791 (0x317), region = 52  ;;  %s3345_s21 = smov (!%p293_p2), 12   ;;  %vm876_vm4 = vcmask (!%p293_p2), 130048   ;;  %vm893_vm5 = vcmask (!%p293_p2), 162816   ;;  %vm910_vm6 = vcmask (!%p293_p2), 195584   ;;  %vm927_vm7 = vcmask (!%p293_p2), 228352  }
   0x7   : > { %s3346_s22 = smov (!%p293_p2), 8   ;;  %s3347_s23 = smov (!%p293_p2), 16   ;;  %vm944_vm8 = vcmask (!%p293_p2), 261120   ;;  %vm1008_vm9 = vcmask (!%p293_p2), 293888   ;;  %vm1106_vm10 = vcmask (!%p293_p2), 1040384   ;;  %vm1133_vm12 = vcmask (!%p293_p2), 1044484  }
   0x8   : > { %s3348_s24 = smov (!%p293_p2), 20   ;;  %s3350_s14 = smov (!%p293_p2), 28   ;;  %vm1107_vm11 = vsmask.f32 (!%p293_p2), 256  ;;  %vm1134_vm13 = vsmask.f32 (!%p293_p2), 7954 }
   0x9   : > { %s3351_s15 = smov (!%p293_p2), 32   ;;  %vm3796_vm14 = vmand (!%p293_p2), %vm1106_vm10, %vm1107_vm11 }
   0xa   : > { %vm3802_vm15 = vmand (!%p293_p2), %vm1133_vm12, %vm1134_vm13 }
   0xd   : > { %s4146_s28 = smov (!%p341_p3, %s2766_s28), 1 }
   0xe   : > { %s3409_s29 = smul.u32 72, %s4146_s28 }
  0x10   : > { %s3415_s10 = scalar_lea.vmem %s4131_s1, %s3409_s29  ;;  %s3421_s13 = scalar_lea.vmem %s4132_s2, %s3409_s29 }
  0x11   : > { %v3424_v0 = vld [vmem:[%s3415_s10 + $0x10] ss:$0 sps:$4 sm:$0xff]   ;;  %s3430_s16 = scalar_lea.vmem %s4130_s0, %s3409_s29  ;;  %v3195_v1 = vld [vmem:[%s3415_s10] ss:$0 sps:$4 sm:$0xff]   ;;  %v3436_v2 = vld [vmem:[%s3415_s10 + $0x18] ss:$0 sps:$4 sm:$0xff]   ;;  %s3472_s20 = scalar_lea.vmem %s4133_s3, %s3409_s29 }
  0x12   : > { %446 = vrot.lane.b32.xlu1 %v3424_v0, %s3344_s17  ;;  %442 = vrot.lane.b32.xlu0 %v3195_v1, %s3344_s17  ;;  %v3440_v3 = vld [vmem:[%s3415_s10 + $0x8] ss:$0 sps:$4 sm:$0xff]   ;;  %v394_v5 = vld [vmem:[%s3421_s13] sm:$0xf]  ;;  %s3349_s29 = smov 24  }
  0x13   : > { %v396_v4 = vld [vmem:[%s3421_s13 + $0x8] sm:$0xf]  ;;  %v370_v7 = vld [vmem:[%s3430_s16 + $0xc] sm:$0x1]  ;;  %v3449_v8 = vld [vmem:[%s3430_s16] sm:$0xf]  ;;  %v2793_v18 = vcombine.low %v394_v5, %v394_v5 }
  0x14   : > { %v3445_v6 = vld [vmem:[%s3430_s16 + $0x8] sm:$0xf]  ;;  %v368_v10 = vld [vmem:[%s3430_s16 + $0x4] sm:$0x1]  ;;  %v3454_v11 = vld [vmem:[%s3430_s16 + $0x18] sm:$0xf]  ;;  %v2794_v13 = vcombine.low %v396_v4, %v396_v4 }
  0x15   : > { %v2786_v9 = vcombine.low %v3445_v6, %v370_v7  ;;  %v374_v12 = vld [vmem:[%s3430_s16 + $0x1c] sm:$0x1]  ;;  %v2785_v14 = vcombine.low %v3449_v8, %v368_v10  ;;  %v3462_v16 = vld [vmem:[%s3430_s16 + $0x10] sm:$0xf]  ;;  %v372_v17 = vld [vmem:[%s3430_s16 + $0x14] sm:$0x1] }
  0x16   : > { %448 = vrot.lane.b32.xlu1 %v3436_v2, %s3344_s17  ;;  %v2788_v15 = vcombine.low %v3454_v11, %v374_v12  ;;  %444 = vrot.lane.b32.xlu0 %v3440_v3, %s3344_s17  ;;  %v2787_v21 = vcombine.low %v3462_v16, %v372_v17  ;;  %v3479_v33 = vld [vmem:[%s3472_s20 + $0x8] sm:$0xf]  ;;  %v3482_v34 = vld [vmem:[%s3472_s20] sm:$0xf] }
  0x17   : > { %v506_v19 = vshrl.u32 %v2786_v9, 16  ;;  %v508_v20 = vshll.u32 %v2786_v9, 16  ;;  %v499_v22 = vshrl.u32 %v2785_v14, 16  ;;  %v501_v23 = vshll.u32 %v2785_v14, 16  ;;  %v3487_v37 = vld [vmem:[%s3472_s20 + $0x18] sm:$0xf] }
  0x18   : > { %v522_v24 = vshll.u32 %v2788_v15, 16  ;;  %v515_v26 = vshll.u32 %v2787_v21, 16  ;;  %v520_v28 = vshrl.u32 %v2788_v15, 16  ;;  %v513_v31 = vshrl.u32 %v2787_v21, 16  ;;  %v3490_v38 = vld [vmem:[%s3472_s20 + $0x10] sm:$0xf] }
  0x19   : > { %v510_v25 = vrot.slane %v508_v20, 1  ;;  %v503_v27 = vrot.slane %v501_v23, 1  ;;  %v2857_v36 = vcombine.low %v3482_v34, %v3479_v33  ;;  %v397_v39 = vld [vmem:[%s3421_s13 + $0xc] sm:$0x1]  ;;  %v395_v40 = vld [vmem:[%s3421_s13 + $0x4] sm:$0x1]  ;;  %v2867_v41 = vcombine.low %v3490_v38, %v3487_v37 }
  0x1a   : > { %596 = vrot.lane.b32.xlu1 %v2794_v13, %s3345_s21  ;;  %v524_v29 = vrot.slane %v522_v24, 1  ;;  %594 = vrot.lane.b32.xlu0 %v2793_v18, %s3345_s21  ;;  %v517_v32 = vrot.slane %v515_v26, 1  ;;  %v400_v44 = vld [vmem:[%s3421_s13 + $0x18] sm:$0xf]  ;;  %v401_v45 = vld [vmem:[%s3421_s13 + $0x1c] sm:$0x1]  ;;  %v2810_v46 = vcombine.low %v396_v4, %v397_v39  ;;  %v2809_v47 = vcombine.low %v394_v5, %v395_v40 }
  0x1b   : > { %v3476_v30 = vor.u32 %v510_v25, %v506_v19  ;;  %v504_v35 = vor.u32 %v503_v27, %v499_v22  ;;  %v398_v48 = vld [vmem:[%s3421_s13 + $0x10] sm:$0xf]  ;;  %v399_v49 = vld [vmem:[%s3421_s13 + $0x14] sm:$0x1]  ;;  %v2796_v50 = vcombine.low %v400_v44, %v400_v44  ;;  %v2812_v51 = vcombine.low %v400_v44, %v401_v45  ;;  %v376_v58 = vld [vmem:[%s3430_s16 + $0x24] sm:$0x1] }
  0x1c   : > { %v3498_v42 = vor.u32 %v524_v29, %v520_v28  ;;  %v3501_v43 = vor.u32 %v517_v32, %v513_v31  ;;  %v2795_v52 = vcombine.low %v398_v48, %v398_v48  ;;  %v2811_v53 = vcombine.low %v398_v48, %v399_v49  ;;  %v3519_v63 = vld [vmem:[%s3430_s16 + $0x20] sm:$0xf]  ;;  %v3522_v5 = vld [vmem:[%s3430_s16 + $0x28] sm:$0xf]  ;;  %v378_v7 = vld [vmem:[%s3430_s16 + $0x2c] sm:$0x1] }
  0x1d   : > { %v684_v54 = vshll.u32 %v2810_v46, 16  ;;  %v677_v55 = vshll.u32 %v2809_v47, 16  ;;  %v2802_v56 = vcombine.low %v3479_v33, %v3479_v33  ;;  %v2801_v57 = vcombine.low %v3482_v34, %v3482_v34  ;;  %v3529_v10 = vld [vmem:[%s3430_s16 + $0x38] sm:$0xf]  ;;  %v3532_v12 = vld [vmem:[%s3472_s20 + $0x28] sm:$0xf] }
  0x1e   : > { %556 = vrot.lane.b32.xlu1 %v3476_v30, %s3346_s22  ;;  %554 = vrot.lane.b32.xlu0 %v504_v35, %s3346_s22  ;;  %v682_v59 = vshrl.u32 %v2810_v46, 16  ;;  %v675_v60 = vshrl.u32 %v2809_v47, 16  ;;  %v698_v61 = vshll.u32 %v2812_v51, 16  ;;  %v691_v62 = vshll.u32 %v2811_v53, 16  ;;  %v3535_v13 = vld [vmem:[%s3472_s20 + $0x20] sm:$0xf] }
  0x1f   : > { %v686_v1 = vrot.slane %v684_v54, 1  ;;  %v679_v4 = vrot.slane %v677_v55, 1  ;;  %v3526_v9 = vcombine.low %v3519_v63, %v376_v58  ;;  %v2804_v14 = vcombine.low %v3487_v37, %v3487_v37  ;;  %v3543_v17 = vld [vmem:[%s3472_s20 + $0x38] sm:$0xf]  ;;  %v3546_v18 = vld [vmem:[%s3472_s20 + $0x30] sm:$0xf] }
  0x20   : > { %v2877_v15 = vcombine.low %v3535_v13, %v3532_v12  ;;  %v2803_v19 = vcombine.low %v3490_v38, %v3490_v38  ;;  %v382_v20 = vld [vmem:[%s3430_s16 + $0x3c] sm:$0x1]  ;;  %v2887_v21 = vcombine.low %v3546_v18, %v3543_v17  ;;  %v696_v22 = vshrl.u32 %v2812_v51, 16  ;;  %v3564_v32 = vld [vmem:[%s3430_s16 + $0x30] sm:$0xf] }
  0x21   : > { %v689_v23 = vshrl.u32 %v2811_v53, 16  ;;  %v529_v24 = vshll.u32 %v3526_v9, 16  ;;  %v3556_v25 = vcombine.low %v3522_v5, %v378_v7  ;;  %v687_v26 = vor.u32 %v686_v1, %v682_v59  ;;  %v380_v35 = vld [vmem:[%s3430_s16 + $0x34] sm:$0x1]  ;;  %v3248_v53 = vld [vmem:[%s4134_s4] sm:$0xff]  }
  0x22   : > { %560 = vrot.lane.b32.xlu1 %v3498_v42, %s3346_s22  ;;  %558 = vrot.lane.b32.xlu0 %v3501_v43, %s3346_s22  ;;  %v700_v27 = vrot.slane %v698_v61, 1  ;;  %v693_v28 = vrot.slane %v691_v62, 1  ;;  %v3560_v29 = vcombine.low %v3529_v10, %v382_v20  ;;  %v680_v31 = vor.u32 %v679_v4, %v675_v60  ;;  %v3250_v59 = vld [vmem:[%s4134_s4 + $0x10] ss:$0 sps:$4 sm:$0x33]  }
  0x23   : > { %v527_v39 = vshrl.u32 %v3526_v9, 16  ;;  %v531_v40 = vrot.slane %v529_v24, 1  ;;  %v534_v44 = vshrl.u32 %v3556_v25, 16  ;;  %v536_v45 = vshll.u32 %v3556_v25, 16  ;;  %3143 = vmatprep.subr.bf16.mxu0 %v3248_v53  ;;  %v3220_v60 = vld [vmem:[%s3415_s10 + $0x20] ss:$0 sps:$4 sm:$0xff]  }
  0x24   : > { %v701_v46 = vor.u32 %v700_v27, %v696_v22  ;;  %v548_v47 = vshrl.u32 %v3560_v29, 16  ;;  %v550_v48 = vshll.u32 %v3560_v29, 16  ;;  %v694_v49 = vor.u32 %v693_v28, %v689_v23  ;;  %3144 = vmatpush3.bf16.msra.mxu0 %v3248_v53  ;;  %v402_v9 = vld [vmem:[%s3421_s13 + $0x20] sm:$0xf]  ;;  %v405_v20 = vld [vmem:[%s3421_s13 + $0x2c] sm:$0x1] }
  0x25   : > { %v2818_v51 = vcombine.low %v3462_v16, %v3462_v16  ;;  %v2817_v54 = vcombine.low %v3445_v6, %v3445_v6  ;;  %v2820_v55 = vcombine.low %v3519_v63, %v3519_v63  ;;  %v2819_v58 = vcombine.low %v3454_v11, %v3454_v11  ;;  %v408_v23 = vld [vmem:[%s3421_s13 + $0x38] sm:$0xf]  ;;  %v403_v24 = vld [vmem:[%s3421_s13 + $0x24] sm:$0x1]  ;;  %v406_v25 = vld [vmem:[%s3421_s13 + $0x30] sm:$0xf] }
  0x26   : > { %600 = vrot.lane.b32.xlu1 %v2796_v50, %s3345_s21  ;;  %598 = vrot.lane.b32.xlu0 %v2795_v52, %s3345_s21  ;;  %v2791_v50 = vcombine.low %v3564_v32, %v380_v35  ;;  %v538_v61 = vrot.slane %v536_v45, 1  ;;  %v552_v62 = vrot.slane %v550_v48, 1  ;;  %v1023_v4 = vsel %vm1021_vm0, %v3250_v59, 0  ;;  %v409_v29 = vld [vmem:[%s3421_s13 + $0x3c] sm:$0x1] }
  0x27   : > { %v532_v7 = vor.u32 %v531_v40, %v527_v39  ;;  %v2797_v22 = vcombine.low %v402_v9, %v402_v9  ;;  %v2800_v27 = vcombine.low %v408_v23, %v408_v23  ;;  %v2813_v28 = vcombine.low %v402_v9, %v403_v24  ;;  %v407_v35 = vld [vmem:[%s3421_s13 + $0x34] sm:$0x1] }
  0x28   : > { %v541_v52 = vshrl.u32 %v2791_v50, 16  ;;  %v2816_v39 = vcombine.low %v408_v23, %v409_v29  ;;  %v2806_v40 = vcombine.low %v3532_v12, %v3532_v12  ;;  %v2815_v45 = vcombine.low %v406_v25, %v407_v35  ;;  %v3247_v23 = vld [vmem:[%s3415_s10 + $0x40] ss:$0 sps:$4 sm:$0xff]  }
  0x29   : > { %v2808_v48 = vcombine.low %v3543_v17, %v3543_v17  ;;  %v703_v53 = vshrl.u32 %v2813_v28, 16 }
  0x2a   : > { %636 = vrot.lane.b32.xlu1 %v2802_v56, %s3347_s23  ;;  %634 = vrot.lane.b32.xlu0 %v2801_v57, %s3347_s23  ;;  %v543_v56 = vshll.u32 %v2791_v50, 16  ;;  %v3249_v57 = vld [vmem:[%s4134_s4 + $0x8] sm:$0xff]  }
  0x2b   : > { %3145 = vmatprep.subr.bf16.mxu0 %v3249_v57 }
  0x2c   : > { %3146 = vmatpush3.bf16.msra.mxu0 %v3249_v57  ;;  %v545_v1 = vrot.slane %v543_v56, 1  ;;  %v724_v57 = vshrl.u32 %v2816_v39, 16 }
  0x2d   : > { %3175 = vmatprep.subr.msk.bf16.mxu0 %vm1021_vm0, %v3250_v59 }
  0x2e   : > { %640 = vrot.lane.b32.xlu1 %v2804_v14, %s3347_s23  ;;  %638 = vrot.lane.b32.xlu0 %v2803_v19, %s3347_s23  ;;  %v3640_v14 = vor.u32 %v545_v1, %v541_v52  ;;  %v2807_v52 = vcombine.low %v3546_v18, %v3546_v18 }
  0x30   : > { %3148 = vmatpush3.bf16.msra.mxu0 %v1023_v4  ;;  %v2822_v4 = vcombine.low %v3564_v32, %v3564_v32 }
  0x32   : > { %732 = vrot.lane.b32.xlu1 %v687_v26, %s3348_s24  ;;  %730 = vrot.lane.b32.xlu0 %v680_v31, %s3348_s24  ;;  %v2799_v31 = vcombine.low %v406_v25, %v406_v25 }
  0x36   : > { %736 = vrot.lane.b32.xlu1 %v701_v46, %s3348_s24  ;;  %734 = vrot.lane.b32.xlu0 %v694_v49, %s3348_s24  ;;  %v2805_v46 = vcombine.low %v3535_v13, %v3535_v13 }
  0x3a   : > { %758 = vrot.lane.b32.xlu1 %v2818_v51, %s3349_s29  ;;  %756 = vrot.lane.b32.xlu0 %v2817_v54, %s3349_s29  ;;  %v726_v51 = vshll.u32 %v2816_v39, 16 }
  0x3e   : > { %762 = vrot.lane.b32.xlu1 %v2820_v55, %s3349_s29  ;;  %760 = vrot.lane.b32.xlu0 %v2819_v58, %s3349_s29  ;;  %v719_v55 = vshll.u32 %v2815_v45, 16  ;;  %v728_v58 = vrot.slane %v726_v51, 1 }
  0x42   : > { %777 = vrot.lane.b32.xlu1 %v3424_v0, %s3350_s14  ;;  %775 = vrot.lane.b32.xlu0 %v3440_v3, %s3350_s14  ;;  %v3613_v0 = vld [vmem:[%s3415_s10 + $0x28] ss:$0 sps:$4 sm:$0xff]   ;;  %v3619_v3 = vld [vmem:[%s3415_s10 + $0x38] ss:$0 sps:$4 sm:$0xff]  }
  0x46   : > { %781 = vrot.lane.b32.xlu1 %v3220_v60, %s3350_s14  ;;  %779 = vrot.lane.b32.xlu0 %v3436_v2, %s3350_s14  ;;  %v3622_v2 = vld [vmem:[%s3415_s10 + $0x30] ss:$0 sps:$4 sm:$0xff]  }
  0x4a   : > { %803 = vrot.lane.b32.xlu1 %v3501_v43, %s3351_s15  ;;  %801 = vrot.lane.b32.xlu0 %v3476_v30, %s3351_s15  ;;  %v3629_v30 = vor.u32 %v538_v61, %v534_v44  ;;  %v3636_v43 = vor.u32 %v552_v62, %v548_v47  ;;  %v705_v47 = vshll.u32 %v2813_v28, 16  ;;  %v721_v61 = vrot.slane %v719_v55, 1 }
  0x4b   : > { %v729_v62 = vor.u32 %v728_v58, %v724_v57 }
  0x4c   : > { %v707_v54 = vrot.slane %v705_v47, 1 }
  0x4e   : > { %807 = vrot.lane.b32.xlu1 %v532_v7, %s3351_s15  ;;  %805 = vrot.lane.b32.xlu0 %v3498_v42, %s3351_s15  ;;  %v404_v42 = vld [vmem:[%s3421_s13 + $0x28] sm:$0xf]  ;;  %v708_v59 = vor.u32 %v707_v54, %v703_v53 }
  0x4f   : > { %v2798_v19 = vcombine.low %v404_v42, %v404_v42  ;;  %v2814_v26 = vcombine.low %v404_v42, %v405_v20  ;;  %v383_v42 = vld [vmem:[%s3430_s16 + $0x40] sm:$0xf]  ;;  %v2823_v20 = vcombine.low %v3529_v10, %v3529_v10 }
  0x50   : > { %v2824_v9 = vcombine.low %v383_v42, %v383_v42 }
  0x51   : > { %v712_v44 = vshll.u32 %v2814_v26, 16  ;;  %v710_v49 = vshrl.u32 %v2814_v26, 16 }
  0x52   : > { %452 = vrot.lane.b32.xlu1 %v3613_v0, %s3344_s17  ;;  %450 = vrot.lane.b32.xlu0 %v3220_v60, %s3344_s17  ;;  %v717_v60 = vshrl.u32 %v2815_v45, 16 }
  0x53   : > { %v714_v50 = vrot.slane %v712_v44, 1 }
  0x54   : > { %v722_v1 = vor.u32 %v721_v61, %v717_v60 }
  0x55   : > { %v715_v56 = vor.u32 %v714_v50, %v710_v49 }
  0x56   : > { %456 = vrot.lane.b32.xlu1 %v3619_v3, %s3344_s17  ;;  %454 = vrot.lane.b32.xlu0 %v3622_v2, %s3344_s17 }
  0x5a   : > { %564 = vrot.lane.b32.xlu1 %v3629_v30, %s3346_s22  ;;  %562 = vrot.lane.b32.xlu0 %v532_v7, %s3346_s22  ;;  %v2821_v7 = vcombine.low %v3522_v5, %v3522_v5 }
  0x5e   : > { %568 = vrot.lane.b32.xlu1 %v3636_v43, %s3346_s22  ;;  %566 = vrot.lane.b32.xlu0 %v3640_v14, %s3346_s22 }
  0x62   : > { %604 = vrot.lane.b32.xlu1 %v2798_v19, %s3345_s21  ;;  %602 = vrot.lane.b32.xlu0 %v2797_v22, %s3345_s21  ;;  %v384_v19 = vld [vmem:[%s3430_s16 + $0x44] sm:$0x1] }
  0x63   : > { %v2826_v22 = vcombine.low %v383_v42, %v384_v19 }
  0x65   : > { %v797_v24 = vshll.u32 %v2826_v22, 16  ;;  %v795_v28 = vshrl.u32 %v2826_v22, 16 }
  0x66   : > { %608 = vrot.lane.b32.xlu1 %v2800_v27, %s3345_s21  ;;  %606 = vrot.lane.b32.xlu0 %v2799_v31, %s3345_s21  ;;  %v3251_v27 = vld [vmem:[%s4135_s5 + $0xc0] sm:$0xff]  }
  0x67   : > { %v799_v29 = vrot.slane %v797_v24, 1  ;;  %3023 = vmatprep.subr.bf16.mxu0 %v3251_v27 }
  0x6a   : > { %644 = vrot.lane.b32.xlu1 %v2806_v40, %s3347_s23  ;;  %642 = vrot.lane.b32.xlu0 %v2805_v46, %s3347_s23 }
  0x6e   : > { %648 = vrot.lane.b32.xlu1 %v2808_v48, %s3347_s23  ;;  %646 = vrot.lane.b32.xlu0 %v2807_v52, %s3347_s23 }
  0x72   : > { %740 = vrot.lane.b32.xlu1 %v715_v56, %s3348_s24  ;;  %738 = vrot.lane.b32.xlu0 %v708_v59, %s3348_s24 }
  0x76   : > { %744 = vrot.lane.b32.xlu1 %v729_v62, %s3348_s24  ;;  %742 = vrot.lane.b32.xlu0 %v722_v1, %s3348_s24  ;;  %s2967_s24 = sshll.u32 %s4146_s28, 6 }
  0x7a   : > { %766 = vrot.lane.b32.xlu1 %v2822_v4, %s3349_s29  ;;  %764 = vrot.lane.b32.xlu0 %v2821_v7, %s3349_s29 }
  0x7e   : > { %770 = vrot.lane.b32.xlu1 %v2824_v9, %s3349_s29  ;;  %768 = vrot.lane.b32.xlu0 %v2823_v20, %s3349_s29  ;;  %s4117_s29 = scalar_lea.vmem %s4138_s8, %s2967_s24 }
  0x82   : > { %785 = vrot.lane.b32.xlu1 %v3622_v2, %s3350_s14  ;;  %783 = vrot.lane.b32.xlu0 %v3613_v0, %s3350_s14  ;;  %v800_v0 = vor.u32 %v799_v29, %v795_v28 }
  0x84   : > { %v447_v25 = vpop.permute.xlu1 %446  ;;  %v443_v26 = vpop.permute.xlu0 %442 }
  0x85   : > { %v820_v59 = vsel %vm817_vm1, %v3449_v8, %v443_v26  ;;  %v826_v20 = vsel %vm817_vm1, %v3462_v16, %v447_v25 }
  0x86   : > { %789 = vrot.lane.b32.xlu1 %v3247_v23, %s3350_s14  ;;  %787 = vrot.lane.b32.xlu0 %v3619_v3, %s3350_s14 }
  0x88   : > { %v449_v2 = vpop.permute.xlu1 %448  ;;  %v445_v31 = vpop.permute.xlu0 %444 }
  0x89   : > { %v829_v8 = vsel %vm817_vm1, %v3454_v11, %v449_v2 }
  0x8a   : > { %811 = vrot.lane.b32.xlu1 %v3640_v14, %s3351_s15  ;;  %809 = vrot.lane.b32.xlu0 %v3629_v30, %s3351_s15 }
  0x8c   : > { %v597_v35 = vpop.permute.xlu1 %596  ;;  %v595_v39 = vpop.permute.xlu0 %594 }
  0x8e   : > { %815 = vrot.lane.b32.xlu1 %v800_v0, %s3351_s15  ;;  %813 = vrot.lane.b32.xlu0 %v3636_v43, %s3351_s15  ;;  %v823_v43 = vsel %vm817_vm1, %v3445_v6, %v445_v31 }
  0x90   : > { %v557_v40 = vpop.permute.xlu1 %556  ;;  %v555_v44 = vpop.permute.xlu0 %554 }
  0x91   : > { %v846_v60 = vsel %vm842_vm2, %v823_v43, %v557_v40  ;;  %v844_v62 = vsel %vm842_vm2, %v820_v59, %v555_v44 }
  0x92   : > { %v863_v1 = vsel %vm859_vm3, %v846_v60, %v597_v35  ;;  %v861_v6 = vsel %vm859_vm3, %v844_v62, %v595_v39 }
  0x94   : > { %v561_v3 = vpop.permute.xlu1 %560  ;;  %v559_v45 = vpop.permute.xlu0 %558 }
  0x95   : > { %v850_v22 = vsel %vm842_vm2, %v829_v8, %v561_v3  ;;  %v848_v26 = vsel %vm842_vm2, %v826_v20, %v559_v45 }
  0x98   : > { %v601_v46 = vpop.permute.xlu1 %600  ;;  %v599_v47 = vpop.permute.xlu0 %598 }
  0x99   : > { %v867_v27 = vsel %vm859_vm3, %v850_v22, %v601_v46  ;;  %v865_v2 = vsel %vm859_vm3, %v848_v26, %v599_v47 }
  0x9c   : > { %v637_v48 = vpop.permute.xlu1 %636  ;;  %v635_v49 = vpop.permute.xlu0 %634 }
  0x9d   : > { %v880_v7 = vsel %vm876_vm4, %v863_v1, %v637_v48  ;;  %v878_v9 = vsel %vm876_vm4, %v861_v6, %v635_v49 }
  0xa0   : > { %v641_v14 = vpop.permute.xlu1 %640  ;;  %v639_v50 = vpop.permute.xlu0 %638 }
  0xa1   : > { %v884_v31 = vsel %vm876_vm4, %v867_v27, %v641_v14  ;;  %v882_v35 = vsel %vm876_vm4, %v865_v2, %v639_v50 }
  0xa4   : > { %v733_v51 = vpop.permute.xlu1 %732  ;;  %v731_v52 = vpop.permute.xlu0 %730 }
  0xa5   : > { %v897_v19 = vsel %vm893_vm5, %v880_v7, %v733_v51  ;;  %v895_v23 = vsel %vm893_vm5, %v878_v9, %v731_v52  ;;  %v3252_v52 = vld [vmem:[%s4135_s5 + $0x80] sm:$0xff]  }
  0xa8   : > { %v737_v30 = vpop.permute.xlu1 %736  ;;  %v735_v53 = vpop.permute.xlu0 %734 }
  0xa9   : > { %v901_v39 = vsel %vm893_vm5, %v884_v31, %v737_v30  ;;  %v899_v44 = vsel %vm893_vm5, %v882_v35, %v735_v53 }
  0xac   : > { %v759_v54 = vpop.permute.xlu1 %758  ;;  %v757_v55 = vpop.permute.xlu0 %756 }
  0xad   : > { %v914_v24 = vsel %vm910_vm6, %v897_v19, %v759_v54  ;;  %v912_v11 = vsel %vm910_vm6, %v895_v23, %v757_v55 }
  0xb0   : > { %v763_v56 = vpop.permute.xlu1 %762  ;;  %v761_v57 = vpop.permute.xlu0 %760 }
  0xb1   : > { %v918_v3 = vsel %vm910_vm6, %v901_v39, %v763_v56  ;;  %v916_v46 = vsel %vm910_vm6, %v899_v44, %v761_v57 }
  0xb4   : > { %v778_v58 = vpop.permute.xlu1 %777  ;;  %v776_v61 = vpop.permute.xlu0 %775 }
  0xb5   : > { %v931_v28 = vsel %vm927_vm7, %v914_v24, %v778_v58  ;;  %v929_v16 = vsel %vm927_vm7, %v912_v11, %v776_v61 }
  0xb8   : > { %v782_v4 = vpop.permute.xlu1 %781  ;;  %v780_v42 = vpop.permute.xlu0 %779 }
  0xb9   : > { %v935_v47 = vsel %vm927_vm7, %v918_v3, %v782_v4  ;;  %v933_v49 = vsel %vm927_vm7, %v916_v46, %v780_v42 }
  0xbc   : > { %v804_v29 = vpop.permute.xlu1 %803  ;;  %v802_v0 = vpop.permute.xlu0 %801 }
  0xbd   : > { %v948_v25 = vsel %vm944_vm8, %v931_v28, %v804_v29  ;;  %v946_v40 = vsel %vm944_vm8, %v929_v16, %v802_v0 }
  0xbe   : > { %v2828_v45 = vcombine.low %v946_v40, %v948_v25 }
  0xc0   : > { %v808_v48 = vpop.permute.xlu1 %807  ;;  %3149 = vmatprep.mubr.msk.bf16.mxu0 %vm1008_vm9, %v2828_v45  ;;  %v806_v50 = vpop.permute.xlu0 %805 }
  0xc1   : > { %v952_v14 = vsel %vm944_vm8, %v935_v47, %v808_v48  ;;  %v950_v51 = vsel %vm944_vm8, %v933_v49, %v806_v50 }
  0xc2   : > { %v2829_v30 = vcombine.low %v950_v51, %v952_v14 }
  0xc4   : > { %v453_v53 = vpop.permute.xlu1 %452  ;;  %3150 = vmatmul.mubr.msk.bf16.vlgmr.msra.gmra.mrb[0].mxu0 %vm1008_vm9, %v2829_v30  ;;  %v451_v54 = vpop.permute.xlu0 %450 }
  0xc5   : > { %3024 = vmatpush3.bf16.msra.mxu0 %v3252_v52  ;;  %v835_v28 = vsel %vm817_vm1, %v3522_v5, %v453_v53  ;;  %v832_v29 = vsel %vm817_vm1, %v3519_v63, %v451_v54 }
  0xc8   : > { %v457_v55 = vpop.permute.xlu1 %456  ;;  %v455_v56 = vpop.permute.xlu0 %454 }
  0xc9   : > { %v841_v40 = vsel %vm817_vm1, %v3529_v10, %v457_v55  ;;  %v838_v63 = vsel %vm817_vm1, %v3564_v32, %v455_v56 }
  0xcc   : > { %v565_v57 = vpop.permute.xlu1 %564  ;;  %v563_v43 = vpop.permute.xlu0 %562 }
  0xcd   : > { %v854_v2 = vsel %vm842_vm2, %v835_v28, %v565_v57  ;;  %v852_v31 = vsel %vm842_vm2, %v832_v29, %v563_v43 }
  0xd0   : > { %v569_v58 = vpop.permute.xlu1 %568  ;;  %v567_v59 = vpop.permute.xlu0 %566 }
  0xd1   : > { %v858_v3 = vsel %vm842_vm2, %v841_v40, %v569_v58  ;;  %v856_v47 = vsel %vm842_vm2, %v838_v63, %v567_v59  ;;  %v3260_v63 = vld [vmem:[%s4135_s5 + $0x90] sm:$0xff]   ;;  %vm1244_vm2 = vcmask 1044480  }
  0xd4   : > { %v605_v60 = vpop.permute.xlu1 %604  ;;  %v603_v61 = vpop.permute.xlu0 %602 }
  0xd5   : > { %v871_v16 = vsel %vm859_vm3, %v854_v2, %v605_v60  ;;  %v869_v0 = vsel %vm859_vm3, %v852_v31, %v603_v61  ;;  %v1118_v31 = vld [vmem:[#allocation2 + $0x20] sm:$0x1] }
  0xd8   : > { %v609_v62 = vpop.permute.xlu1 %608  ;;  %v607_v1 = vpop.permute.xlu0 %606 }
  0xd9   : > { %v875_v48 = vsel %vm859_vm3, %v858_v3, %v609_v62  ;;  %v873_v50 = vsel %vm859_vm3, %v856_v47, %v607_v1  ;;  %v3261_v3 = vld [vmem:[%s4135_s5 + $0x50] sm:$0xff]   ;;  %vm1245_vm3 = vsmask.f32 4354 }
  0xda   : > { %v3263_v47 = vld [vmem:[%s4135_s5 + $0x10] sm:$0xff]  }
  0xdc   : > { %v645_v4 = vpop.permute.xlu1 %644  ;;  %v643_v7 = vpop.permute.xlu0 %642 }
  0xdd   : > { %v888_v35 = vsel %vm876_vm4, %v871_v16, %v645_v4  ;;  %v886_v5 = vsel %vm876_vm4, %v869_v0, %v643_v7  ;;  %v3257_v16 = vld [vmem:[%s4135_s5 + $0x48] sm:$0xff]   ;;  %v1145_v0 = vld [vmem:[#allocation2 + $0x20] sm:$0x10] }
  0xde   : > { %v1146_v40 = vsel %vm3802_vm15, 0, %v1145_v0 }
  0xdf   : > { %1147 = vst [vmem:[#allocation2 + $0x20] sm:$0x10] %v1146_v40 }
  0xe0   : > { %v649_v6 = vpop.permute.xlu1 %648  ;;  %v647_v42 = vpop.permute.xlu0 %646 }
  0xe1   : > { %v892_v51 = vsel %vm876_vm4, %v875_v48, %v649_v6  ;;  %v890_v53 = vsel %vm876_vm4, %v873_v50, %v647_v42  ;;  %v3254_v6 = vld [vmem:[%s4135_s5 + $0xc8] sm:$0xff]   ;;  %v3253_v42 = vld [vmem:[%s4135_s5 + $0x40] sm:$0xff]   ;;  %v3264_v48 = vld [vmem:[%s4135_s5 + $0x98] sm:$0xff]  }
  0xe2   : > { %3025 = vmatprep.subr.bf16.mxu0 %v3254_v6  ;;  %2983 = vmatprep.subr.bf16.mxu1 %v3253_v42  ;;  %v3268_v50 = vld [vmem:[%s4135_s5 + $0xa0] sm:$0xff]   ;;  %v1121_v42 = vld [vmem:[#allocation2 + $0x28] sm:$0x1]  ;;  %vm3928_vm4 = vmand %vm1244_vm2, %vm1245_vm3 }
  0xe4   : > { %v741_v8 = vpop.permute.xlu1 %740  ;;  %v739_v9 = vpop.permute.xlu0 %738 }
  0xe5   : > { %v905_v44 = vsel %vm893_vm5, %v888_v35, %v741_v8  ;;  %v903_v45 = vsel %vm893_vm5, %v886_v5, %v739_v9  ;;  %v3256_v8 = vld [vmem:[%s4135_s5 + $0x88] sm:$0xff]   ;;  %v3255_v9 = vld [vmem:[%s4135_s5] sm:$0xff]   ;;  %v1112_v35 = vld [vmem:[#allocation2 + $0x10] sm:$0x1] }
  0xe6   : > { %3026 = vmatpush3.bf16.msra.mxu0 %v3256_v8  ;;  %2984 = vmatpush3.bf16.msra.mxu1 %v3255_v9  ;;  %v1113_v5 = vsel %vm3796_vm14, 0, %v1112_v35  ;;  %v1148_v8 = vld [vmem:[#allocation2 + $0x28] sm:$0x10]  ;;  %v1122_v9 = vsel %vm3796_vm14, 0, %v1121_v42 }
  0xe7   : > { %2985 = vmatprep.subr.bf16.mxu1 %v3257_v16  ;;  %1114 = vst [vmem:[#allocation2 + $0x10] sm:$0x1] %v1113_v5  ;;  %1123 = vst [vmem:[#allocation2 + $0x28] sm:$0x1] %v1122_v9  ;;  %v3289_v16 = vld [vmem:[%s4135_s5 + $0x140] sm:$0xff]  }
  0xe8   : > { %v745_v19 = vpop.permute.xlu1 %744  ;;  %v743_v20 = vpop.permute.xlu0 %742 }
  0xe9   : > { %v909_v54 = vsel %vm893_vm5, %v892_v51, %v745_v19  ;;  %v907_v56 = vsel %vm893_vm5, %v890_v53, %v743_v20  ;;  %v3258_v19 = vld [vmem:[%s4135_s5 + $0xd0] sm:$0xff]   ;;  %v3269_v51 = vld [vmem:[%s4135_s5 + $0x60] sm:$0xff]   ;;  %v3272_v53 = vld [vmem:[%s4135_s5 + $0xa8] sm:$0xff]  }
  0xea   : > { %3027 = vmatprep.subr.bf16.mxu0 %v3258_v19  ;;  %v1149_v19 = vsel %vm3802_vm15, 0, %v1148_v8  ;;  %v3922_v20 = vld [vmem:[%s4136_s6] ss:$0 sm:$0xff] }
  0xeb   : > { %3028 = vmatpush3.bf16.msra.mxu0 %v3260_v63  ;;  %1150 = vst [vmem:[#allocation2 + $0x28] sm:$0x10] %v1149_v19 }
  0xec   : > { %v767_v22 = vpop.permute.xlu1 %766  ;;  %v765_v23 = vpop.permute.xlu0 %764 }
  0xed   : > { %v922_v46 = vsel %vm910_vm6, %v905_v44, %v767_v22  ;;  %v920_v49 = vsel %vm910_vm6, %v903_v45, %v765_v23  ;;  %v1115_v22 = vld [vmem:[#allocation2 + $0x18] sm:$0x1]  ;;  %v1142_v23 = vld [vmem:[#allocation2 + $0x18] sm:$0x10]  ;;  %v1139_v44 = vld [vmem:[#allocation2 + $0x10] sm:$0x10] }
  0xee   : > { %v1143_v28 = vsel %vm3802_vm15, 0, %v1142_v23  ;;  %v1140_v45 = vsel %vm3802_vm15, 0, %v1139_v44  ;;  %v1157_v23 = vld [vmem:[#allocation2 + $0x40] sm:$0x10] }
  0xef   : > { %1144 = vst [vmem:[#allocation2 + $0x18] sm:$0x10] %v1143_v28  ;;  %1141 = vst [vmem:[#allocation2 + $0x10] sm:$0x10] %v1140_v45 }
  0xf0   : > { %v771_v24 = vpop.permute.xlu1 %770  ;;  %v769_v26 = vpop.permute.xlu0 %768 }
  0xf1   : > { %v926_v57 = vsel %vm910_vm6, %v909_v54, %v771_v24  ;;  %v924_v58 = vsel %vm910_vm6, %v907_v56, %v769_v26  ;;  %v1116_v24 = vsel %vm3796_vm14, 0, %v1115_v22  ;;  %v3273_v54 = vld [vmem:[%s4135_s5 + $0x68] sm:$0xff]   ;;  %v1130_v22 = vld [vmem:[#allocation2 + $0x40] sm:$0x1] }
  0xf2   : > { %1117 = vst [vmem:[#allocation2 + $0x18] sm:$0x1] %v1116_v24  ;;  %v3275_v56 = vld [vmem:[%s4135_s5 + $0x28] sm:$0xff]   ;;  %v1131_v24 = vsel %vm3796_vm14, 0, %v1130_v22 }
  0xf3   : > { %1132 = vst [vmem:[#allocation2 + $0x40] sm:$0x1] %v1131_v24 }
  0xf4   : > { %v786_v27 = vpop.permute.xlu1 %785  ;;  %v784_v11 = vpop.permute.xlu0 %783 }
  0xf5   : > { %v939_v10 = vsel %vm927_vm7, %v922_v46, %v786_v27  ;;  %v937_v32 = vsel %vm927_vm7, %v920_v49, %v784_v11  ;;  %v1109_v27 = vld [vmem:[#allocation2 + $0x8] sm:$0x1]  ;;  %v1136_v11 = vld [vmem:[#allocation2 + $0x8] sm:$0x10]  ;;  %v3262_v46 = vld [vmem:[%s4135_s5 + $0xd8] sm:$0xff]  }
  0xf6   : > { %v1110_v29 = vsel %vm3796_vm14, 0, %v1109_v27  ;;  %v1137_v2 = vsel %vm3802_vm15, 0, %v1136_v11  ;;  %3029 = vmatprep.subr.bf16.mxu0 %v3262_v46  ;;  %v3265_v49 = vld [vmem:[%s4135_s5 + $0x58] sm:$0xff]   ;;  %v1158_v27 = vsel %vm3802_vm15, 0, %v1157_v23  ;;  %v1124_v11 = vld [vmem:[#allocation2 + $0x30] sm:$0x1] }
  0xf7   : > { %1111 = vst [vmem:[#allocation2 + $0x8] sm:$0x1] %v1110_v29  ;;  %1138 = vst [vmem:[#allocation2 + $0x8] sm:$0x10] %v1137_v2  ;;  %3030 = vmatpush3.bf16.msra.mxu0 %v3264_v48  ;;  %v1125_v28 = vsel %vm3796_vm14, 0, %v1124_v11 }
  0xf8   : > { %v790_v25 = vpop.permute.xlu1 %789  ;;  %v788_v39 = vpop.permute.xlu0 %787  ;;  %1159 = vst [vmem:[#allocation2 + $0x40] sm:$0x10] %v1158_v27  ;;  %v1151_v29 = vld [vmem:[#allocation2 + $0x30] sm:$0x10]  ;;  %1126 = vst [vmem:[#allocation2 + $0x30] sm:$0x1] %v1125_v28 }
  0xf9   : > { %v943_v59 = vsel %vm927_vm7, %v926_v57, %v790_v25  ;;  %v941_v61 = vsel %vm927_vm7, %v924_v58, %v788_v39  ;;  %v1119_v25 = vsel %vm3796_vm14, 0, %v1118_v31  ;;  %v3259_v39 = vld [vmem:[%s4135_s5 + $0x8] sm:$0xff]   ;;  %v3276_v57 = vld [vmem:[%s4135_s5 + $0xb0] sm:$0xff]   ;;  %v3278_v58 = vld [vmem:[%s4135_s5 + $0xf8] sm:$0xff]   ;;  %v1152_v2 = vsel %vm3802_vm15, 0, %v1151_v29 }
  0xfa   : > { %1120 = vst [vmem:[#allocation2 + $0x20] sm:$0x1] %v1119_v25  ;;  %2986 = vmatpush3.bf16.msra.mxu1 %v3259_v39  ;;  %v3287_v31 = vld [vmem:[%s4135_s5 + $0x1c0] sm:$0xff]   ;;  %1153 = vst [vmem:[#allocation2 + $0x30] sm:$0x10] %v1152_v2 }
  0xfb   : > { %2987 = vmatprep.subr.bf16.mxu1 %v3261_v3  ;;  %v1250_v42 = vld [vmem:[#allocation2 + $0x10] sm:$0x1f] }
  0xfc   : > { %v812_v14 = vpop.permute.xlu1 %811  ;;  %v810_v30 = vpop.permute.xlu0 %809 }
  0xfd   : > { %v956_v52 = vsel %vm944_vm8, %v939_v10, %v812_v14  ;;  %v954_v55 = vsel %vm944_vm8, %v937_v32, %v810_v30  ;;  %v3266_v10 = vld [vmem:[%s4135_s5 + $0xe0] sm:$0xff]   ;;  %v3267_v14 = vld [vmem:[%s4135_s5 + $0x18] sm:$0xff]   ;;  %v3270_v32 = vld [vmem:[%s4135_s5 + $0xe8] sm:$0xff]  }
  0xfe   : > { %v2830_v43 = vcombine.low %v954_v55, %v956_v52  ;;  %2988 = vmatpush3.bf16.msra.mxu1 %v3263_v47  ;;  %3031 = vmatprep.subr.bf16.mxu0 %v3266_v10  ;;  %v3352_v52 = vmov 0   ;;  %v3271_v30 = vld [vmem:[%s4135_s5 + $0x20] sm:$0xff]   ;;  %v3274_v55 = vld [vmem:[%s4135_s5 + $0xf0] sm:$0xff]  }
  0xff   : > { %2989 = vmatprep.subr.bf16.mxu1 %v3265_v49  ;;  %1102 = vst [vmem:[#allocation2] sm:$0xff] %v3352_v52  ;;  %1104 = vst [vmem:[#allocation2 + $0x48] sm:$0xff] %v3352_v52  ;;  %3032 = vmatpush3.bf16.msra.mxu0 %v3268_v50 }
 0x100   : > { %v816_v60 = vpop.permute.xlu1 %815  ;;  %3153 = vmatprep.mubr.msk.bf16.mxu0 %vm1008_vm9, %v2830_v43  ;;  %v814_v1 = vpop.permute.xlu0 %813  ;;  %3033 = vmatprep.subr.bf16.mxu0 %v3270_v32  ;;  %v3277_v43 = vld [vmem:[%s4135_s5 + $0x70] sm:$0xff]  }
 0x101   : > { %v960_v62 = vsel %vm944_vm8, %v943_v59, %v816_v60  ;;  %v958_v4 = vsel %vm944_vm8, %v941_v61, %v814_v1  ;;  %v3279_v59 = vld [vmem:[%s4135_s5 + $0x30] sm:$0xff]   ;;  %v3280_v60 = vld [vmem:[%s4135_s5 + $0xb8] sm:$0xff]  }
 0x102   : > { %v2831_v7 = vcombine.low %v958_v4, %v960_v62  ;;  %2990 = vmatpush3.bf16.msra.mxu1 %v3267_v14  ;;  %v3282_v61 = vld [vmem:[%s4135_s5 + $0x78] sm:$0xff]  }
 0x103   : > { %2991 = vmatprep.subr.bf16.mxu1 %v3269_v51  ;;  %3034 = vmatpush3.bf16.msra.mxu0 %v3272_v53  ;;  %v3283_v62 = vld [vmem:[%s4135_s5 + $0x38] sm:$0xff]  }
 0x104   : > { %3154 = vmatmul.mubr.msk.bf16.gmra.mrb[4].mxu0 %vm1008_vm9, %v2831_v7  ;;  %3035 = vmatprep.subr.bf16.mxu0 %v3274_v55  ;;  %v1127_v1 = vld [vmem:[#allocation2 + $0x38] sm:$0x1]  ;;  %v1154_v4 = vld [vmem:[#allocation2 + $0x38] sm:$0x10] }
 0x105   : > { %v1128_v7 = vsel %vm3796_vm14, 0, %v1127_v1  ;;  %v1155_v6 = vsel %vm3802_vm15, 0, %v1154_v4 }
 0x106   : > { %2992 = vmatpush3.bf16.msra.mxu1 %v3271_v30  ;;  %1129 = vst [vmem:[#allocation2 + $0x38] sm:$0x1] %v1128_v7  ;;  %1156 = vst [vmem:[#allocation2 + $0x38] sm:$0x10] %v1155_v6  ;;  %v1279_v19 = vld [vmem:[#allocation2] sm:$0x1f] }
 0x107   : > { %2993 = vmatprep.subr.bf16.mxu1 %v3273_v54  ;;  %3036 = vmatpush3.bf16.msra.mxu0 %v3276_v57  ;;  %v1253_v54 = vld [vmem:[#allocation2 + $0x18] sm:$0x1f]  ;;  %v1347_v24 = vshll.u32 %v1279_v19, 16  ;;  %v1287_v27 = vld [vmem:[#allocation2] sm:$0x1e]  ;;  %v1345_v28 = vshrl.u32 %v1279_v19, 16 }
 0x108   : > { %3037 = vmatprep.subr.bf16.mxu0 %v3278_v58  ;;  %v1247_v58 = vld [vmem:[#allocation2 + $0x8] sm:$0x1f]  ;;  %v1408_v11 = vrot.slane %v1287_v27, 1  ;;  %v3299_v19 = vld [vmem:[%s4135_s5 + $0x110] sm:$0xff]  }
 0x109   : > { %v1349_v29 = vrot.slane %v1347_v24, 1  ;;  %v3305_v24 = vld [vmem:[%s4135_s5 + $0x1a0] sm:$0xff]   ;;  %v3308_v27 = vld [vmem:[%s4135_s5 + $0x1e8] sm:$0xff]  }
 0x10a   : > { %2994 = vmatpush3.bf16.msra.mxu1 %v3275_v56 }
 0x10b   : > { %2995 = vmatprep.subr.bf16.mxu1 %v3277_v43  ;;  %3038 = vmatpush3.bf16.msra.mxu0 %v3280_v60 }
 0x10c   : > { %3103 = vmatprep.subr.bf16.mxu0 %v3287_v31 }
 0x10e   : > { %2996 = vmatpush3.bf16.msra.mxu1 %v3279_v59 }
 0x10f   : > { %2997 = vmatprep.subr.bf16.mxu1 %v3282_v61 }
 0x112   : > { %2998 = vmatpush3.bf16.msra.mxu1 %v3283_v62  ;;  %v1256_v62 = vld [vmem:[#allocation2 + $0x20] sm:$0x1f] }
 0x113   : > { %3063 = vmatprep.subr.bf16.mxu1 %v3289_v16 }
 0x197   : > { %v3151_v25 = vpop.f32.mrb[0].mxu0 }
 0x198   : > { %v1068_v26 = vadd.f32 %v3151_v25, %v3922_v20  ;;  %v1059_v0 = vpop.f32.mrb[1].mxu0 }
 0x199   : > { %v1060_v35 = vadd.f32 %v3922_v20, %v1059_v0  ;;  %v3152_v39 = vpop.f32.mrb[2].mxu0 }
 0x19a   : > { %v1092_v40 = vmax.f32 %v1068_v26, 0.0  ;;  %v1071_v5 = vadd.f32 %v3152_v39, %v3922_v20  ;;  %v1062_v44 = vpop.f32.mrb[3].mxu0  ;;  %v3288_v26 = vld [vmem:[%s4135_s5 + $0x180] sm:$0xff]   ;;  %v3290_v39 = vld [vmem:[%s4135_s5 + $0x1c8] sm:$0xff]  }
 0x19b   : > { %v1090_v63 = vmax.f32 %v1060_v35, 0.0  ;;  %v1063_v3 = vadd.f32 %v3922_v20, %v1062_v44  ;;  %v1350_v44 = vor.u32 %v1349_v29, %v1345_v28  ;;  %v3307_v28 = vld [vmem:[%s4135_s5 + $0x160] sm:$0xff]   ;;  %v3311_v29 = vld [vmem:[%s4135_s5 + $0x1a8] sm:$0xff]  }
 0x19c   : > { %v2970_v45 = vpack.c.bf16 %v1092_v40, %v1092_v40  ;;  %v1093_v46 = vmax.f32 %v1071_v5, 0.0 }
 0x19d   : > { %v2968_v47 = vpack.c.bf16 %v1090_v63, %v1090_v63  ;;  %v1091_v48 = vmax.f32 %v1063_v3, 0.0 }
 0x19e   : > { %v1195_v49 = vshrl.u32 %v2970_v45, 16  ;;  %v2971_v10 = vpack.c.bf16 %v1093_v46, %v1093_v46  ;;  %v1198_v32 = vshll.u32 %v2970_v45, 16 }
 0x19f   : > { %v1181_v14 = vshrl.u32 %v2968_v47, 16  ;;  %v2969_v50 = vpack.c.bf16 %v1091_v48, %v1091_v48  ;;  %v1184_v56 = vshll.u32 %v2968_v47, 16 }
 0x1a0   : > { %v1197_v51 = vrot.slane %v1195_v49, 7  ;;  %v1202_v30 = vshrl.u32 %v2971_v10, 16  ;;  %v1205_v60 = vshll.u32 %v2971_v10, 16 }
 0x1a1   : > { %v1183_v55 = vrot.slane %v1181_v14, 7  ;;  %v1188_v57 = vshrl.u32 %v2969_v50, 16  ;;  %v1191_v4 = vshll.u32 %v2969_v50, 16 }
 0x1a2   : > { %v1200_v43 = vor.u32 %v1198_v32, %v1197_v51  ;;  %v1204_v59 = vrot.slane %v1202_v30, 7  ;;  %v3292_v30 = vld [vmem:[%s4135_s5 + $0x188] sm:$0xff]  }
 0x1a3   : > { %v1186_v61 = vor.u32 %v1184_v56, %v1183_v55  ;;  %v1190_v1 = vrot.slane %v1188_v57, 7  ;;  %v3294_v55 = vld [vmem:[%s4135_s5 + $0x1d0] sm:$0xff]  }
 0x1a4   : > { %v1254_v7 = vsel %vm3928_vm4, %v1200_v43, %v1253_v54  ;;  %v1207_v6 = vor.u32 %v1205_v60, %v1204_v59 }
 0x1a5   : > { %1255 = vst [vmem:[#allocation2 + $0x18] sm:$0x1f] %v1254_v7  ;;  %v1248_v8 = vsel %vm3928_vm4, %v1186_v61, %v1247_v58  ;;  %v1193_v9 = vor.u32 %v1191_v4, %v1190_v1  ;;  %v3291_v58 = vld [vmem:[%s4135_s5 + $0x100] sm:$0xff]   ;;  %v3293_v61 = vld [vmem:[%s4135_s5 + $0x148] sm:$0xff]   ;;  %v3296_v1 = vld [vmem:[%s4135_s5 + $0x190] sm:$0xff]  }
 0x1a6   : > { %1249 = vst [vmem:[#allocation2 + $0x8] sm:$0x1f] %v1248_v8  ;;  %v1257_v22 = vsel %vm3928_vm4, %v1207_v6, %v1256_v62  ;;  %v3298_v7 = vld [vmem:[%s4135_s5 + $0x1d8] sm:$0xff]   ;;  %v3295_v6 = vld [vmem:[%s4135_s5 + $0x108] sm:$0xff]  }
 0x1a7   : > { %1258 = vst [vmem:[#allocation2 + $0x20] sm:$0x1f] %v1257_v22  ;;  %v1251_v23 = vsel %vm3928_vm4, %v1193_v9, %v1250_v42  ;;  %v3297_v42 = vld [vmem:[%s4135_s5 + $0x150] sm:$0xff]   ;;  %v3300_v8 = vld [vmem:[%s4135_s5 + $0x198] sm:$0xff]   ;;  %v3303_v9 = vld [vmem:[%s4135_s5 + $0x1e0] sm:$0xff]  }
 0x1a8   : > { %1252 = vst [vmem:[#allocation2 + $0x10] sm:$0x1f] %v1251_v23  ;;  %v3302_v23 = vld [vmem:[%s4135_s5 + $0x158] sm:$0xff]  }
 0x1ac   : > { %v1282_v25 = vld [vmem:[#allocation2 + $0x18] sm:$0x1f] }
 0x1ad   : > { %v1288_v2 = vld [vmem:[#allocation2 + $0x8] sm:$0x1e]  ;;  %v1368_v47 = vshll.u32 %v1282_v25, 16  ;;  %v1366_v49 = vshrl.u32 %v1282_v25, 16  ;;  %v1290_v32 = vld [vmem:[#allocation2 + $0x18] sm:$0x1e] }
 0x1ae   : > { %v1280_v31 = vld [vmem:[#allocation2 + $0x8] sm:$0x1f]  ;;  %v1409_v16 = vrot.slane %v1288_v2, 1  ;;  %v3284_v5 = vld [vmem:[#allocation2 + $0x18] ss:$8 sps:$4 sm:$0xff]   ;;  %v1411_v60 = vrot.slane %v1290_v32, 1 }
 0x1af   : > { %v3281_v0 = vld [vmem:[#allocation2 + $0x8] ss:$8 sps:$4 sm:$0xff]   ;;  %v1354_v35 = vshll.u32 %v1280_v31, 16  ;;  %v1352_v3 = vshrl.u32 %v1280_v31, 16  ;;  %v1370_v51 = vrot.slane %v1368_v47, 1  ;;  %v3310_v31 = vld [vmem:[%s4135_s5 + $0x120] sm:$0xff]  }
 0x1b0   : > { %v2850_v40 = vcombine.low %v1408_v11, %v1409_v16  ;;  %v1281_v63 = vld [vmem:[#allocation2 + $0x10] sm:$0x1f]  ;;  %2431 = vmatprep.mubr.bf16.mxu0 %v3281_v0  ;;  %v3285_v59 = vld [vmem:[#allocation2] ss:$8 sps:$4 sm:$0xff]   ;;  %v3304_v11 = vld [vmem:[%s4135_s5 + $0x118] sm:$0xff]  }
 0x1b1   : > { %v1356_v45 = vrot.slane %v1354_v35, 1  ;;  %v1361_v46 = vshll.u32 %v1281_v63, 16  ;;  %v1289_v48 = vld [vmem:[#allocation2 + $0x10] sm:$0x1e]  ;;  %v1359_v14 = vshrl.u32 %v1281_v63, 16  ;;  %v1371_v43 = vor.u32 %v1370_v51, %v1366_v49  ;;  %v3312_v16 = vld [vmem:[%s4135_s5 + $0x168] sm:$0xff]  }
 0x1b2   : > { %2432 = vmatmul.mubr.bf16.vlgmr.msra.gmra.mrb[8].mxu0 %v2850_v40  ;;  %v1410_v54 = vrot.slane %v1289_v48, 1  ;;  %v3286_v22 = vld [vmem:[#allocation2 + $0x10] ss:$8 sps:$4 sm:$0xff]   ;;  %v3314_v0 = vld [vmem:[%s4135_s5 + $0x128] sm:$0xff]  }
 0x1b3   : > { %2439 = vmatprep.mubr.bf16.mxu0 %v3284_v5  ;;  %v1357_v10 = vor.u32 %v1356_v45, %v1352_v3  ;;  %v1363_v50 = vrot.slane %v1361_v46, 1  ;;  %3104 = vmatpush3.bf16.msra.mxu0 %v3288_v26  ;;  %v3313_v2 = vld [vmem:[%s4135_s5 + $0x1f0] sm:$0xff]   ;;  %v3317_v26 = vld [vmem:[%s4135_s5 + $0x1f8] sm:$0xff]  }
 0x1b4   : > { %3105 = vmatprep.subr.bf16.mxu0 %v3290_v39  ;;  %v2860_v4 = vcombine.low %v1410_v54, %v1411_v60  ;;  %v3315_v25 = vld [vmem:[%s4135_s5 + $0x1b0] sm:$0xff]   ;;  %v3320_v39 = vld [vmem:[%s4135_s5 + $0x1b8] sm:$0xff]  }
 0x1b5   : > { %v2849_v56 = vcombine.low %v1350_v44, %v1357_v10  ;;  %v1364_v57 = vor.u32 %v1363_v50, %v1359_v14  ;;  %v3316_v35 = vld [vmem:[%s4135_s5 + $0x170] sm:$0xff]   ;;  %v3321_v5 = vld [vmem:[%s4135_s5 + $0x178] sm:$0xff]  }
 0x1b6   : > { %v3319_v40 = vld [vmem:[%s4135_s5 + $0x130] sm:$0xff]   ;;  %v3322_v44 = vld [vmem:[%s4135_s5 + $0x138] sm:$0xff]  }
 0x1b7   : > { %2366 = vmatprep.mubr.bf16.mxu1 %v2849_v56  ;;  %v2859_v62 = vcombine.low %v1364_v57, %v1371_v43  ;;  %3106 = vmatpush3.bf16.msra.mxu0 %v3292_v30 }
 0x1b8   : > { %2367 = vmatmul.mubr.bf16.vlgmr.msra.gmra.mrb[0].mxu1 %v3285_v59  ;;  %3107 = vmatprep.subr.bf16.mxu0 %v3294_v55 }
 0x1b9   : > { %2374 = vmatprep.mubr.bf16.mxu1 %v2859_v62  ;;  %3064 = vmatpush3.bf16.msra.mxu1 %v3291_v58 }
 0x1ba   : > { %2440 = vmatmul.mubr.bf16.gmra.mrb[12].mxu0 %v2860_v4  ;;  %3065 = vmatprep.subr.bf16.mxu1 %v3293_v61  ;;  %v1265_v61 = vld [vmem:[#allocation2 + $0x38] sm:$0x1f] }
 0x1bb   : > { %3108 = vmatpush3.bf16.msra.mxu0 %v3296_v1 }
 0x1bc   : > { %3109 = vmatprep.subr.bf16.mxu0 %v3298_v7 }
 0x1bd   : > { %3066 = vmatpush3.bf16.msra.mxu1 %v3295_v6  ;;  %v1259_v6 = vld [vmem:[#allocation2 + $0x28] sm:$0x1f] }
 0x1be   : > { %3067 = vmatprep.subr.bf16.mxu1 %v3297_v42 }
 0x1bf   : > { %3110 = vmatpush3.bf16.msra.mxu0 %v3300_v8 }
 0x1c0   : > { %2375 = vmatmul.mubr.bf16.gmra.mrb[4].mxu1 %v3286_v22  ;;  %3111 = vmatprep.subr.bf16.mxu0 %v3303_v9  ;;  %v1268_v9 = vld [vmem:[#allocation2 + $0x40] sm:$0x1f] }
 0x1c1   : > { %3068 = vmatpush3.bf16.msra.mxu1 %v3299_v19 }
 0x1c2   : > { %3069 = vmatprep.subr.bf16.mxu1 %v3302_v23 }
 0x1c3   : > { %3112 = vmatpush3.bf16.msra.mxu0 %v3305_v24 }
 0x1c4   : > { %3113 = vmatprep.subr.bf16.mxu0 %v3308_v27  ;;  %v1262_v27 = vld [vmem:[#allocation2 + $0x30] sm:$0x1f] }
 0x1c5   : > { %3070 = vmatpush3.bf16.msra.mxu1 %v3304_v11 }
 0x1c6   : > { %3071 = vmatprep.subr.bf16.mxu1 %v3307_v28 }
 0x1c7   : > { %3114 = vmatpush3.bf16.msra.mxu0 %v3311_v29 }
 0x1c8   : > { %3115 = vmatprep.subr.bf16.mxu0 %v3313_v2 }
 0x1c9   : > { %3072 = vmatpush3.bf16.msra.mxu1 %v3310_v31  ;;  %v1283_v31 = vld [vmem:[#allocation2 + $0x20] sm:$0x1f] }
 0x1ca   : > { %3073 = vmatprep.subr.bf16.mxu1 %v3312_v16  ;;  %v1328_v16 = vld [vmem:[#allocation2 + $0x10] sm:$0x1f] }
 0x1cb   : > { %3116 = vmatpush3.bf16.msra.mxu0 %v3315_v25  ;;  %v1291_v25 = vld [vmem:[#allocation2 + $0x20] sm:$0x1e] }
 0x1cc   : > { %3117 = vmatprep.subr.bf16.mxu0 %v3317_v26  ;;  %v1329_v26 = vld [vmem:[#allocation2 + $0x18] sm:$0x1f] }
 0x1cd   : > { %3074 = vmatpush3.bf16.msra.mxu1 %v3314_v0  ;;  %v1375_v0 = vshll.u32 %v1283_v31, 16 }
 0x1ce   : > { %3075 = vmatprep.subr.bf16.mxu1 %v3316_v35  ;;  %v1491_v35 = vshll.u32 %v1328_v16, 16 }
 0x1cf   : > { %3118 = vmatpush3.bf16.msra.mxu0 %v3320_v39  ;;  %v1412_v39 = vrot.slane %v1291_v25, 1  ;;  %v1303_v25 = vld [vmem:[#allocation2 + $0x8] sm:$0x1f] }
 0x1d0   : > { %2594 = vmatprep.subr.bf16.mxu0 %v3352_v52  ;;  %v1493_v53 = vrot.slane %v1491_v35, 1 }
 0x1d1   : > { %3076 = vmatpush3.bf16.msra.mxu1 %v3319_v40  ;;  %v1373_v40 = vshrl.u32 %v1283_v31, 16 }
 0x1d2   : > { %3077 = vmatprep.subr.bf16.mxu1 %v3321_v5  ;;  %v1489_v5 = vshrl.u32 %v1328_v16, 16 }
 0x1d5   : > { %3078 = vmatpush3.bf16.msra.mxu1 %v3322_v44  ;;  %v1498_v44 = vshll.u32 %v1329_v26, 16 }
 0x1d6   : > { %3157 = vmatprep.subr.bf16.mxu1 %v3352_v52 }
 0x1d7   : > { %v3155_v63 = vpop.f32.mrb[4].mxu0 }
 0x1d8   : > { %v1084_v3 = vadd.f32 %v3155_v63, %v3922_v20  ;;  %v1075_v45 = vpop.f32.mrb[5].mxu0 }
 0x1d9   : > { %v1076_v46 = vadd.f32 %v3922_v20, %v1075_v45  ;;  %v3156_v47 = vpop.f32.mrb[6].mxu0 }
 0x1da   : > { %v1096_v48 = vmax.f32 %v1084_v3, 0.0  ;;  %v1087_v49 = vadd.f32 %v3156_v47, %v3922_v20  ;;  %v1078_v10 = vpop.f32.mrb[7].mxu0 }
 0x1db   : > { %v1094_v14 = vmax.f32 %v1076_v46, 0.0  ;;  %v1079_v50 = vadd.f32 %v3922_v20, %v1078_v10  ;;  %v1377_v46 = vrot.slane %v1375_v0, 1 }
 0x1dc   : > { %v2974_v51 = vpack.c.bf16 %v1096_v48, %v1096_v48  ;;  %v1097_v32 = vmax.f32 %v1087_v49, 0.0 }
 0x1dd   : > { %v2972_v30 = vpack.c.bf16 %v1094_v14, %v1094_v14  ;;  %v1095_v54 = vmax.f32 %v1079_v50, 0.0 }
 0x1de   : > { %v1223_v55 = vshrl.u32 %v2974_v51, 16  ;;  %v2975_v56 = vpack.c.bf16 %v1097_v32, %v1097_v32  ;;  %v1226_v59 = vshll.u32 %v2974_v51, 16 }
 0x1df   : > { %v1209_v57 = vshrl.u32 %v2972_v30, 16  ;;  %v2973_v43 = vpack.c.bf16 %v1095_v54, %v1095_v54  ;;  %v1212_v1 = vshll.u32 %v2972_v30, 16 }
 0x1e0   : > { %v1225_v58 = vrot.slane %v1223_v55, 7  ;;  %v1230_v60 = vshrl.u32 %v2975_v56, 16  ;;  %v1233_v8 = vshll.u32 %v2975_v56, 16 }
 0x1e1   : > { %v1211_v62 = vrot.slane %v1209_v57, 7  ;;  %v1216_v4 = vshrl.u32 %v2973_v43, 16  ;;  %v1219_v22 = vshll.u32 %v2973_v43, 16  ;;  %v1378_v57 = vor.u32 %v1377_v46, %v1373_v40 }
 0x1e2   : > { %v1228_v7 = vor.u32 %v1226_v59, %v1225_v58  ;;  %v1232_v42 = vrot.slane %v1230_v60, 7  ;;  %v1500_v58 = vrot.slane %v1498_v44, 1  ;;  %v1419_v44 = vshll.u32 %v1303_v25, 16 }
 0x1e3   : > { %v1214_v20 = vor.u32 %v1212_v1, %v1211_v62  ;;  %v1218_v19 = vrot.slane %v1216_v4, 7 }
 0x1e4   : > { %v1266_v23 = vsel %vm3928_vm4, %v1228_v7, %v1265_v61  ;;  %v1235_v24 = vor.u32 %v1233_v8, %v1232_v42  ;;  %v1494_v7 = vor.u32 %v1493_v53, %v1489_v5  ;;  %v1330_v42 = vld [vmem:[#allocation2 + $0x20] sm:$0x1f] }
 0x1e5   : > { %1267 = vst [vmem:[#allocation2 + $0x38] sm:$0x1f] %v1266_v23  ;;  %v1260_v11 = vsel %vm3928_vm4, %v1214_v20, %v1259_v6  ;;  %v1221_v28 = vor.u32 %v1219_v22, %v1218_v19  ;;  %v1496_v6 = vshrl.u32 %v1329_v26, 16  ;;  %v1311_v26 = vld [vmem:[#allocation2 + $0x8] sm:$0x1e] }
 0x1e6   : > { %1261 = vst [vmem:[#allocation2 + $0x28] sm:$0x1f] %v1260_v11  ;;  %v1269_v29 = vsel %vm3928_vm4, %v1235_v24, %v1268_v9  ;;  %v1505_v11 = vshll.u32 %v1330_v42, 16 }
 0x1e7   : > { %1270 = vst [vmem:[#allocation2 + $0x40] sm:$0x1f] %v1269_v29  ;;  %v1263_v2 = vsel %vm3928_vm4, %v1221_v28, %v1262_v27  ;;  %v1501_v27 = vor.u32 %v1500_v58, %v1496_v6  ;;  %v1304_v28 = vld [vmem:[#allocation2 + $0x10] sm:$0x1f]  ;;  %v1335_v58 = vld [vmem:[#allocation2 + $0x48] sm:$0x1f] }
 0x1e8   : > { %1264 = vst [vmem:[#allocation2 + $0x30] sm:$0x1f] %v1263_v2  ;;  %v1312_v2 = vld [vmem:[#allocation2 + $0x10] sm:$0x1e]  ;;  %v1426_v0 = vshll.u32 %v1304_v28, 16  ;;  %v1507_v40 = vrot.slane %v1505_v11, 1 }
 0x1e9   : > { %v2855_v31 = vcombine.low %v1494_v7, %v1501_v27 }
 0x1ec   : > { %v1286_v47 = vld [vmem:[#allocation2 + $0x38] sm:$0x1f] }
 0x1ed   : > { %v1292_v63 = vld [vmem:[#allocation2 + $0x28] sm:$0x1e]  ;;  %v1396_v54 = vshll.u32 %v1286_v47, 16  ;;  %v1294_v56 = vld [vmem:[#allocation2 + $0x38] sm:$0x1e]  ;;  %v1394_v43 = vshrl.u32 %v1286_v47, 16 }
 0x1ee   : > { %v1284_v3 = vld [vmem:[#allocation2 + $0x28] sm:$0x1f]  ;;  %v1413_v45 = vrot.slane %v1292_v63, 1  ;;  %v3306_v14 = vld [vmem:[#allocation2 + $0x38] ss:$8 sps:$4 sm:$0xff]   ;;  %v1415_v23 = vrot.slane %v1294_v56, 1 }
 0x1ef   : > { %v3301_v48 = vld [vmem:[#allocation2 + $0x28] ss:$8 sps:$4 sm:$0xff]   ;;  %v1382_v49 = vshll.u32 %v1284_v3, 16  ;;  %v1380_v51 = vshrl.u32 %v1284_v3, 16  ;;  %v1398_v62 = vrot.slane %v1396_v54, 1  ;;  %v1480_v3 = vrot.slane %v1311_v26, 1 }
 0x1f0   : > { %v2870_v10 = vcombine.low %v1412_v39, %v1413_v45  ;;  %v1285_v50 = vld [vmem:[#allocation2 + $0x30] sm:$0x1f]  ;;  %2447 = vmatprep.mubr.bf16.mxu0 %v3301_v48  ;;  %v1331_v1 = vld [vmem:[#allocation2 + $0x28] sm:$0x1f]  ;;  %v1481_v39 = vrot.slane %v1312_v2, 1  ;;  %v1503_v45 = vshrl.u32 %v1330_v42, 16 }
 0x1f1   : > { %v1384_v32 = vrot.slane %v1382_v49, 1  ;;  %v1389_v30 = vshll.u32 %v1285_v50, 16  ;;  %v1293_v55 = vld [vmem:[#allocation2 + $0x30] sm:$0x1e]  ;;  %v1387_v60 = vshrl.u32 %v1285_v50, 16  ;;  %v1399_v9 = vor.u32 %v1398_v62, %v1394_v43 }
 0x1f2   : > { %2448 = vmatmul.mubr.bf16.gmra.mrb[16].mxu0 %v2870_v10  ;;  %v1414_v4 = vrot.slane %v1293_v55, 1  ;;  %v1512_v19 = vshll.u32 %v1331_v1, 16  ;;  %v3309_v22 = vld [vmem:[#allocation2 + $0x20] ss:$8 sps:$4 sm:$0xff]   ;;  %v1332_v35 = vld [vmem:[#allocation2 + $0x30] sm:$0x1f]  ;;  %v2853_v53 = vcombine.low %v1480_v3, %v1481_v39 }
 0x1f3   : > { %2455 = vmatprep.mubr.bf16.mxu0 %v3306_v14  ;;  %v1385_v59 = vor.u32 %v1384_v32, %v1380_v51  ;;  %v1391_v61 = vrot.slane %v1389_v30, 1  ;;  %v1510_v5 = vshrl.u32 %v1331_v1, 16  ;;  %v1333_v63 = vld [vmem:[#allocation2 + $0x38] sm:$0x1f]  ;;  %v1519_v47 = vshll.u32 %v1332_v35, 16  ;;  %v3324_v10 = vld [vmem:[%s4135_s5 + $0x200] sm:$0xff]  }
 0x1f4   : > { %v2880_v29 = vcombine.low %v1414_v4, %v1415_v23  ;;  %v1514_v16 = vrot.slane %v1512_v19, 1  ;;  %v3318_v48 = vld [vmem:[#allocation2 + $0x30] ss:$8 sps:$4 sm:$0xff]   ;;  %v1428_v49 = vrot.slane %v1426_v0, 1  ;;  %v1508_v14 = vor.u32 %v1507_v40, %v1503_v45  ;;  %v1306_v51 = vld [vmem:[#allocation2 + $0x20] sm:$0x1f] }
 0x1f5   : > { %v2869_v8 = vcombine.low %v1378_v57, %v1385_v59  ;;  %v1392_v20 = vor.u32 %v1391_v61, %v1387_v60  ;;  %v1526_v50 = vshll.u32 %v1333_v63, 16  ;;  %v3323_v32 = vld [vmem:[#allocation2 + $0x10] ss:$8 sps:$4 sm:$0xff]   ;;  %v1421_v30 = vrot.slane %v1419_v44, 1  ;;  %v1314_v55 = vld [vmem:[#allocation2 + $0x20] sm:$0x1e] }
 0x1f6   : > { %v1515_v46 = vor.u32 %v1514_v16, %v1510_v5  ;;  %v1424_v54 = vshrl.u32 %v1304_v28, 16  ;;  %v1521_v57 = vrot.slane %v1519_v47, 1  ;;  %v1305_v43 = vld [vmem:[#allocation2 + $0x18] sm:$0x1f]  ;;  %v1417_v59 = vshrl.u32 %v1303_v25, 16  ;;  %v3325_v4 = vld [vmem:[%s4135_s5 + $0x208] sm:$0xff]  }
 0x1f7   : > { %2382 = vmatprep.mubr.bf16.mxu1 %v2869_v8  ;;  %v2879_v24 = vcombine.low %v1392_v20, %v1399_v9  ;;  %v1313_v61 = vld [vmem:[#allocation2 + $0x18] sm:$0x1e]  ;;  %v1440_v62 = vshll.u32 %v1306_v51, 16  ;;  %v1334_v1 = vld [vmem:[#allocation2 + $0x40] sm:$0x1f]  ;;  %v1483_v7 = vrot.slane %v1314_v55, 1 }
 0x1f8   : > { %2383 = vmatmul.mubr.bf16.gmra.mrb[8].mxu1 %v3309_v22  ;;  %v2865_v56 = vcombine.low %v1508_v14, %v1515_v46  ;;  %v1429_v60 = vor.u32 %v1428_v49, %v1424_v54  ;;  %v1517_v6 = vshrl.u32 %v1332_v35, 16  ;;  %v1528_v42 = vrot.slane %v1526_v50, 1  ;;  %v3326_v16 = vld [vmem:[#allocation2 + $0x20] ss:$8 sps:$4 sm:$0xff]   ;;  %v1316_v0 = vld [vmem:[#allocation2 + $0x30] sm:$0x1e] }
 0x1f9   : > { %2390 = vmatprep.mubr.bf16.mxu1 %v2879_v24  ;;  %v1422_v8 = vor.u32 %v1421_v30, %v1417_v59  ;;  %v1433_v20 = vshll.u32 %v1305_v43, 16  ;;  %v1540_v9 = vshll.u32 %v1335_v58, 16  ;;  %v1482_v19 = vrot.slane %v1313_v61, 1  ;;  %v1307_v44 = vld [vmem:[#allocation2 + $0x28] sm:$0x1f]  ;;  %v3328_v47 = vld [vmem:[%s4135_s5 + $0x218] sm:$0xff]  }
 0x1fa   : > { %2456 = vmatmul.mubr.bf16.gmra.mrb[20].mxu0 %v2880_v29  ;;  %v1522_v22 = vor.u32 %v1521_v57, %v1517_v6  ;;  %v1524_v23 = vshrl.u32 %v1333_v63, 16  ;;  %v1533_v24 = vshll.u32 %v1334_v1, 16  ;;  %v1442_v11 = vrot.slane %v1440_v62, 1  ;;  %v3327_v29 = vld [vmem:[%s4135_s5 + $0x210] sm:$0xff]   ;;  %v1315_v45 = vld [vmem:[#allocation2 + $0x28] sm:$0x1e] }
 0x1fb   : > { %2561 = vmatprep.mubr.bf16.mxu0 %v2855_v31  ;;  %v2852_v27 = vcombine.low %v1422_v8, %v1429_v60  ;;  %v2863_v28 = vcombine.low %v1482_v19, %v1483_v7  ;;  %v1308_v31 = vld [vmem:[#allocation2 + $0x30] sm:$0x1f]  ;;  %v1435_v25 = vrot.slane %v1433_v20, 1  ;;  %v1438_v26 = vshrl.u32 %v1306_v51, 16  ;;  %v3330_v55 = vld [vmem:[%s4135_s5 + $0x220] sm:$0xff]   ;;  %v3331_v6 = vld [vmem:[%s4135_s5 + $0x228] sm:$0xff]  }
 0x1fc   : > { %v1529_v2 = vor.u32 %v1528_v42, %v1524_v23  ;;  %v1535_v39 = vrot.slane %v1533_v24, 1  ;;  %v1538_v40 = vshrl.u32 %v1335_v58, 16  ;;  %v1542_v5 = vrot.slane %v1540_v9, 1  ;;  %v3329_v57 = vld [vmem:[#allocation2 + $0x30] ss:$8 sps:$4 sm:$0xff]  }
 0x1fd   : > { %v1431_v63 = vshrl.u32 %v1305_v43, 16  ;;  %v1443_v3 = vor.u32 %v1442_v11, %v1438_v26  ;;  %v1454_v46 = vshll.u32 %v1308_v31, 16  ;;  %v1531_v49 = vshrl.u32 %v1334_v1, 16  ;;  %v1318_v59 = vld [vmem:[#allocation2 + $0x40] sm:$0x1e]  ;;  %v3333_v24 = vld [vmem:[%s4135_s5 + $0x230] sm:$0xff]  }
 0x1fe   : > { %v2875_v35 = vcombine.low %v1522_v22, %v1529_v2  ;;  %v1484_v14 = vrot.slane %v1315_v45, 1  ;;  %v1543_v51 = vor.u32 %v1542_v5, %v1538_v40  ;;  %v1452_v58 = vshrl.u32 %v1308_v31, 16  ;;  %v1309_v61 = vld [vmem:[#allocation2 + $0x38] sm:$0x1f]  ;;  %v1336_v26 = vld [vmem:[#allocation2 + $0x10] sm:$0x1e] }
 0x1ff   : > { %v1536_v50 = vor.u32 %v1535_v39, %v1531_v49  ;;  %v1456_v30 = vrot.slane %v1454_v46, 1  ;;  %v1445_v62 = vshrl.u32 %v1307_v44, 16  ;;  %v1487_v42 = vrot.slane %v1318_v59, 1  ;;  %v3334_v31 = vld [vmem:[%s4135_s5 + $0x238] sm:$0xff]   ;;  %v1339_v39 = vld [vmem:[#allocation2 + $0x28] sm:$0x1e] }
 0x200   : > { %2391 = vmatmul.mubr.bf16.gmra.mrb[12].mxu1 %v3318_v48  ;;  %v1485_v48 = vrot.slane %v1316_v0, 1  ;;  %v1461_v20 = vshll.u32 %v1309_v61, 16  ;;  %v1552_v34 = vrot.slane %v1336_v26, 1  ;;  %v1338_v5 = vld [vmem:[#allocation2 + $0x20] sm:$0x1e] }
 0x201   : > { %2496 = vmatprep.mubr.bf16.mxu1 %v2853_v53  ;;  %v1436_v53 = vor.u32 %v1435_v25, %v1431_v63  ;;  %v2885_v60 = vcombine.low %v1536_v50, %v1543_v51  ;;  %v1457_v1 = vor.u32 %v1456_v30, %v1452_v58  ;;  %v3335_v25 = vld [vmem:[%s4135_s5 + $0x240] ss:$0 sps:$4 sm:$0x33]   ;;  %v1554_v63 = vrot.slane %v1338_v5, 1  ;;  %v1340_v45 = vld [vmem:[#allocation2 + $0x30] sm:$0x1e] }
 0x202   : > { %2562 = vmatmul.mubr.bf16.vlgmr.msra.gmra.mrb[24].mxu0 %v3323_v32  ;;  %v2873_v54 = vcombine.low %v1484_v14, %v1485_v48  ;;  %v1463_v11 = vrot.slane %v1461_v20, 1  ;;  %v2332_v33 = vsel %vm1021_vm0, %v3335_v25, 0  ;;  %v1341_v37 = vld [vmem:[#allocation2 + $0x38] sm:$0x1e]  ;;  %v1556_v38 = vrot.slane %v1340_v45, 1 }
 0x203   : > { %2595 = vmatpush1.bf16.msra.mxu0 %v3324_v10  ;;  %2569 = vmatprep.mubr.bf16.mxu0 %v2865_v56  ;;  %v2862_v32 = vcombine.low %v1436_v53, %v1443_v3  ;;  %v1310_v56 = vld [vmem:[#allocation2 + $0x40] sm:$0x1f]  ;;  %v1343_v48 = vld [vmem:[#allocation2 + $0x48] sm:$0x1e] }
 0x204   : > { %2596 = vmatprep.subr.bf16.mxu0 %v3352_v52  ;;  %v1468_v7 = vshll.u32 %v1310_v56, 16  ;;  %v1559_v49 = vrot.slane %v1343_v48, 1 }
 0x206   : > { %v1470_v22 = vrot.slane %v1468_v7, 1 }
 0x207   : > { %2597 = vmatpush1.bf16.msra.mxu0 %v3325_v4 }
 0x208   : > { %2497 = vmatmul.mubr.bf16.vlgmr.msra.gmra.mrb[16].mxu1 %v2852_v27  ;;  %2598 = vmatprep.subr.bf16.mxu0 %v3352_v52  ;;  %v3332_v27 = vld [vmem:[#allocation2 + $0x40] ss:$8 sps:$4 sm:$0xff]  }
 0x209   : > { %3166 = vmatpush1.bf16.msra.mxu1 %v3324_v10  ;;  %2504 = vmatprep.mubr.bf16.mxu1 %v2863_v28  ;;  %v1447_v10 = vshll.u32 %v1307_v44, 16  ;;  %v1466_v28 = vshrl.u32 %v1310_v56, 16  ;;  %v1555_v44 = vrot.slane %v1339_v39, 1 }
 0x20a   : > { %3158 = vmatprep.subr.bf16.mxu1 %v3352_v52  ;;  %2570 = vmatmul.mubr.bf16.gmra.mrb[28].mxu0 %v3326_v16 }
 0x20b   : > { %2599 = vmatpush1.bf16.msra.mxu0 %v3327_v29  ;;  %2577 = vmatprep.mubr.bf16.mxu0 %v2875_v35  ;;  %v1449_v43 = vrot.slane %v1447_v10, 1  ;;  %v1471_v2 = vor.u32 %v1470_v22, %v1466_v28  ;;  %v1337_v35 = vld [vmem:[#allocation2 + $0x18] sm:$0x1e]  ;;  %v2866_v3 = vcombine.low %v1554_v63, %v1555_v44 }
 0x20c   : > { %2600 = vmatprep.subr.bf16.mxu0 %v3352_v52 }
 0x20d   : > { %3167 = vmatpush1.bf16.msra.mxu1 %v3325_v4  ;;  %v1317_v4 = vld [vmem:[#allocation2 + $0x38] sm:$0x1e]  ;;  %v1450_v8 = vor.u32 %v1449_v43, %v1445_v62 }
 0x20e   : > { %3159 = vmatprep.subr.bf16.mxu1 %v3352_v52  ;;  %v1486_v9 = vrot.slane %v1317_v4, 1 }
 0x20f   : > { %2601 = vmatpush1.bf16.msra.mxu0 %v3328_v47  ;;  %v2872_v19 = vcombine.low %v1450_v8, %v1457_v1 }
 0x210   : > { %2505 = vmatmul.mubr.bf16.gmra.mrb[20].mxu1 %v2862_v32  ;;  %2602 = vmatprep.subr.bf16.mxu0 %v3352_v52  ;;  %v2883_v23 = vcombine.low %v1486_v9, %v1487_v42  ;;  %v2847_v32 = vld [vmem:[%s4137_s7] ss:$0 sm:$0xff] }
 0x211   : > { %3168 = vmatpush1.bf16.msra.mxu1 %v3327_v29  ;;  %2512 = vmatprep.mubr.bf16.mxu1 %v2873_v54  ;;  %v1459_v29 = vshrl.u32 %v1309_v61, 16 }
 0x212   : > { %3160 = vmatprep.subr.bf16.mxu1 %v3352_v52  ;;  %2578 = vmatmul.mubr.bf16.gmra.mrb[32].mxu0 %v3329_v57 }
 0x213   : > { %2603 = vmatpush1.bf16.msra.mxu0 %v3330_v55  ;;  %2585 = vmatprep.mubr.bf16.mxu0 %v2885_v60  ;;  %v1464_v16 = vor.u32 %v1463_v11, %v1459_v29 }
 0x214   : > { %2604 = vmatprep.subr.bf16.mxu0 %v3352_v52 }
 0x215   : > { %3169 = vmatpush1.bf16.msra.mxu1 %v3328_v47  ;;  %v2882_v0 = vcombine.low %v1464_v16, %v1471_v2  ;;  %v1342_v47 = vld [vmem:[#allocation2 + $0x40] sm:$0x1e] }
 0x216   : > { %3161 = vmatprep.subr.bf16.mxu1 %v3352_v52 }
 0x217   : > { %2605 = vmatpush1.bf16.msra.mxu0 %v3331_v6 }
 0x218   : > { %2513 = vmatmul.mubr.bf16.gmra.mrb[24].mxu1 %v2872_v19  ;;  %2606 = vmatprep.subr.bf16.mxu0 %v3352_v52 }
 0x219   : > { %3170 = vmatpush1.bf16.msra.mxu1 %v3330_v55  ;;  %2520 = vmatprep.mubr.bf16.mxu1 %v2883_v23 }
 0x21a   : > { %3162 = vmatprep.subr.bf16.mxu1 %v3352_v52  ;;  %2586 = vmatmul.mubr.bf16.gmra.mrb[36].mxu0 %v3332_v27 }
 0x21b   : > { %2607 = vmatpush1.bf16.msra.mxu0 %v3333_v24  ;;  %2961 = vmatprep.mubr.msk.bf16.mxu0 %vm817_vm1, %v2857_v36  ;;  %v1553_v36 = vrot.slane %v1337_v35, 1 }
 0x21c   : > { %2608 = vmatprep.subr.bf16.mxu0 %v3352_v52 }
 0x21d   : > { %3171 = vmatpush1.bf16.msra.mxu1 %v3331_v6  ;;  %v2856_v40 = vcombine.low %v1552_v34, %v1553_v36 }
 0x21e   : > { %3163 = vmatprep.subr.bf16.mxu1 %v3352_v52 }
 0x21f   : > { %2609 = vmatpush1.bf16.msra.mxu0 %v3334_v31 }
 0x220   : > { %2521 = vmatmul.mubr.bf16.gmra.mrb[28].mxu1 %v2882_v0  ;;  %2610 = vmatprep.subr.bf16.mxu0 %v3352_v52 }
 0x221   : > { %3172 = vmatpush1.bf16.msra.mxu1 %v3333_v24  ;;  %2962 = vmatprep.mubr.msk.bf16.mxu1 %vm817_vm1, %v2867_v41  ;;  %v1557_v41 = vrot.slane %v1341_v37, 1 }
 0x222   : > { %3164 = vmatprep.subr.bf16.mxu1 %v3352_v52 }
 0x223   : > { %2611 = vmatpush1.bf16.msra.mxu0 %v2332_v33  ;;  %v2876_v46 = vcombine.low %v1556_v38, %v1557_v41 }
 0x225   : > { %3173 = vmatpush1.bf16.msra.mxu1 %v3334_v31 }
 0x226   : > { %3165 = vmatprep.subr.bf16.mxu1 %v3352_v52  ;;  %2627 = vmatmul.mubr.bf16.vlgmr.msra.gmra.mrb[40].mxu0 %v2856_v40  ;;  %v1558_v52 = vrot.slane %v1342_v47, 1 }
 0x228   : > { %v2886_v53 = vcombine.low %v1558_v52, %v1559_v49 }
 0x229   : > { %3174 = vmatpush1.bf16.msra.mxu1 %v2332_v33 }
 0x22c   : > { %2635 = vmatmul.mubr.bf16.vlgmr.msra.gmra.mrb[32].mxu1 %v2866_v3 }
 0x22d   : > { %2963 = vmatprep.mubr.msk.bf16.mxu1 %vm817_vm1, %v2877_v15 }
 0x234   : > { %2643 = vmatmul.mubr.bf16.gmra.mrb[36].mxu1 %v2876_v46 }
 0x235   : > { %2964 = vmatprep.mubr.msk.bf16.mxu1 %vm817_vm1, %v2887_v21 }
 0x23c   : > { %2651 = vmatmul.mubr.bf16.gmra.mrb[40].mxu1 %v2886_v53 }
 0x285   : > { %v3039_v10 = vpop.f32.mrb[8].mxu0 }
 0x286   : > { %v3040_v12 = vpop.f32.mrb[9].mxu0 }
 0x287   : > { %v3041_v13 = vadd.f32 %v3040_v12, %v3039_v10  ;;  %v3042_v15 = vpop.f32.mrb[10].mxu0 }
 0x288   : > { %v3043_v14 = vpop.f32.mrb[11].mxu0 }
 0x289   : > { %v3044_v50 = vadd.f32 %v3043_v14, %v3042_v15 }
 0x28b   : > { %v2999_v51 = vpop.f32.mrb[0].mxu1 }
 0x28c   : > { %v3000_v30 = vpop.f32.mrb[1].mxu1 }
 0x28d   : > { %v3001_v54 = vadd.f32 %v3000_v30, %v2999_v51  ;;  %v3002_v17 = vpop.f32.mrb[2].mxu1  ;;  %v3045_v18 = vpop.f32.mrb[12].mxu0 }
 0x28e   : > { %v3003_v21 = vpop.f32.mrb[3].mxu1  ;;  %v3046_v55 = vpop.f32.mrb[13].mxu0 }
 0x28f   : > { %v2369_v56 = vadd.f32 %v3001_v54, %v2847_v32  ;;  %v3004_v57 = vadd.f32 %v3003_v21, %v3002_v17  ;;  %v3047_v43 = vadd.f32 %v3046_v55, %v3045_v18  ;;  %v3048_v58 = vpop.f32.mrb[14].mxu0 }
 0x290   : > { %v3049_v59 = vpop.f32.mrb[15].mxu0 }
 0x291   : > { %v2372_v60 = vadd.f32 %v3004_v57, %v2847_v32  ;;  %v3050_v61 = vadd.f32 %v3049_v59, %v3048_v58  ;;  %v2434_v62 = vadd.f32 %v3041_v13, %v2369_v56 }
 0x293   : > { %v3005_v1 = vpop.f32.mrb[4].mxu1  ;;  %v2437_v4 = vadd.f32 %v3044_v50, %v2372_v60 }
 0x294   : > { %v3006_v7 = vpop.f32.mrb[5].mxu1 }
 0x295   : > { %v3007_v6 = vadd.f32 %v3006_v7, %v3005_v1  ;;  %v3008_v42 = vpop.f32.mrb[6].mxu1 }
 0x296   : > { %v3009_v8 = vpop.f32.mrb[7].mxu1 }
 0x297   : > { %v2377_v20 = vadd.f32 %v3007_v6, %v2847_v32  ;;  %v3010_v9 = vadd.f32 %v3009_v8, %v3008_v42 }
 0x299   : > { %v2380_v19 = vadd.f32 %v3010_v9, %v2847_v32  ;;  %v4107_v22 = vadd.f32 %v3047_v43, %v2377_v20 }
 0x29b   : > { %v4109_v23 = vadd.f32 %v3050_v61, %v2380_v19 }
 0x2c5   : > { %v3051_v24 = vpop.f32.mrb[16].mxu0 }
 0x2c6   : > { %v3052_v27 = vpop.f32.mrb[17].mxu0 }
 0x2c7   : > { %v3053_v11 = vadd.f32 %v3052_v27, %v3051_v24  ;;  %v3054_v28 = vpop.f32.mrb[18].mxu0 }
 0x2c8   : > { %v3055_v29 = vpop.f32.mrb[19].mxu0 }
 0x2c9   : > { %v3056_v2 = vadd.f32 %v3055_v29, %v3054_v28 }
 0x2cb   : > { %v3011_v31 = vpop.f32.mrb[8].mxu1 }
 0x2cc   : > { %v3012_v16 = vpop.f32.mrb[9].mxu1 }
 0x2cd   : > { %v3013_v25 = vadd.f32 %v3012_v16, %v3011_v31  ;;  %v3014_v26 = vpop.f32.mrb[10].mxu1  ;;  %v3057_v0 = vpop.f32.mrb[20].mxu0 }
 0x2ce   : > { %v3015_v35 = vpop.f32.mrb[11].mxu1  ;;  %v3058_v33 = vpop.f32.mrb[21].mxu0 }
 0x2cf   : > { %v2385_v34 = vadd.f32 %v3013_v25, %v2847_v32  ;;  %v3016_v36 = vadd.f32 %v3015_v35, %v3014_v26  ;;  %v3059_v39 = vadd.f32 %v3058_v33, %v3057_v0  ;;  %v3060_v40 = vpop.f32.mrb[22].mxu0 }
 0x2d0   : > { %v3061_v5 = vpop.f32.mrb[23].mxu0 }
 0x2d1   : > { %v2388_v44 = vadd.f32 %v3016_v36, %v2847_v32  ;;  %v3062_v63 = vadd.f32 %v3061_v5, %v3060_v40  ;;  %v2450_v3 = vadd.f32 %v3053_v11, %v2385_v34 }
 0x2d3   : > { %v3017_v45 = vpop.f32.mrb[12].mxu1  ;;  %v2453_v37 = vadd.f32 %v3056_v2, %v2388_v44 }
 0x2d4   : > { %v3018_v38 = vpop.f32.mrb[13].mxu1 }
 0x2d5   : > { %v3019_v41 = vadd.f32 %v3018_v38, %v3017_v45  ;;  %v3020_v46 = vpop.f32.mrb[14].mxu1  ;;  %v3119_v47 = vpop.f32.mrb[24].mxu0 }
 0x2d6   : > { %v3021_v48 = vpop.f32.mrb[15].mxu1  ;;  %v3120_v52 = vpop.f32.mrb[25].mxu0 }
 0x2d7   : > { %v2393_v49 = vadd.f32 %v3019_v41, %v2847_v32  ;;  %v3022_v53 = vadd.f32 %v3021_v48, %v3020_v46  ;;  %v3121_v10 = vadd.f32 %v3120_v52, %v3119_v47  ;;  %v3122_v12 = vpop.f32.mrb[26].mxu0 }
 0x2d8   : > { %v3123_v13 = vpop.f32.mrb[27].mxu0 }
 0x2d9   : > { %v2396_v15 = vadd.f32 %v3022_v53, %v2847_v32  ;;  %v3124_v14 = vadd.f32 %v3123_v13, %v3122_v12  ;;  %v2458_v50 = vadd.f32 %v3059_v39, %v2393_v49 }
 0x2db   : > { %v3079_v51 = vpop.f32.mrb[16].mxu1  ;;  %v2461_v30 = vadd.f32 %v3062_v63, %v2396_v15 }
 0x2dc   : > { %v3080_v54 = vpop.f32.mrb[17].mxu1 }
 0x2dd   : > { %v3081_v17 = vadd.f32 %v3080_v54, %v3079_v51  ;;  %v3082_v18 = vpop.f32.mrb[18].mxu1  ;;  %v3125_v21 = vpop.f32.mrb[28].mxu0 }
 0x2de   : > { %v3083_v55 = vpop.f32.mrb[19].mxu1  ;;  %v3126_v56 = vpop.f32.mrb[29].mxu0 }
 0x2df   : > { %v2499_v57 = vadd.f32 %v3081_v17, %v2434_v62  ;;  %v3084_v43 = vadd.f32 %v3083_v55, %v3082_v18  ;;  %v3127_v58 = vadd.f32 %v3126_v56, %v3125_v21  ;;  %v3128_v59 = vpop.f32.mrb[30].mxu0 }
 0x2e0   : > { %v3129_v60 = vpop.f32.mrb[31].mxu0 }
 0x2e1   : > { %v2502_v61 = vadd.f32 %v3084_v43, %v2437_v4  ;;  %v3130_v1 = vadd.f32 %v3129_v60, %v3128_v59  ;;  %v2564_v7 = vadd.f32 %v3121_v10, %v2499_v57 }
 0x2e3   : > { %v3085_v6 = vpop.f32.mrb[20].mxu1  ;;  %v2567_v32 = vadd.f32 %v3124_v14, %v2502_v61 }
 0x2e4   : > { %v3086_v42 = vpop.f32.mrb[21].mxu1 }
 0x2e5   : > { %v3087_v8 = vadd.f32 %v3086_v42, %v3085_v6  ;;  %v3088_v20 = vpop.f32.mrb[22].mxu1  ;;  %v3131_v9 = vpop.f32.mrb[32].mxu0 }
 0x2e6   : > { %v3089_v19 = vpop.f32.mrb[23].mxu1  ;;  %v3132_v24 = vpop.f32.mrb[33].mxu0 }
 0x2e7   : > { %v2507_v27 = vadd.f32 %v3087_v8, %v4107_v22  ;;  %v3090_v11 = vadd.f32 %v3089_v19, %v3088_v20  ;;  %v3133_v28 = vadd.f32 %v3132_v24, %v3131_v9  ;;  %v3134_v62 = vpop.f32.mrb[34].mxu0 }
 0x2e8   : > { %v3135_v29 = vpop.f32.mrb[35].mxu0 }
 0x2e9   : > { %v2510_v2 = vadd.f32 %v3090_v11, %v4109_v23  ;;  %v3136_v31 = vadd.f32 %v3135_v29, %v3134_v62  ;;  %v2572_v4 = vadd.f32 %v3127_v58, %v2507_v27 }
 0x2eb   : > { %v3091_v16 = vpop.f32.mrb[24].mxu1  ;;  %v2575_v25 = vadd.f32 %v3130_v1, %v2510_v2 }
 0x2ec   : > { %v3092_v26 = vpop.f32.mrb[25].mxu1 }
 0x2ed   : > { %v3093_v0 = vadd.f32 %v3092_v26, %v3091_v16  ;;  %v3094_v35 = vpop.f32.mrb[26].mxu1  ;;  %v3137_v33 = vpop.f32.mrb[36].mxu0 }
 0x2ee   : > { %v3095_v34 = vpop.f32.mrb[27].mxu1  ;;  %v3138_v36 = vpop.f32.mrb[37].mxu0 }
 0x2ef   : > { %v2515_v39 = vadd.f32 %v3093_v0, %v2450_v3  ;;  %v3096_v40 = vadd.f32 %v3095_v34, %v3094_v35  ;;  %v3139_v22 = vadd.f32 %v3138_v36, %v3137_v33  ;;  %v3140_v5 = vpop.f32.mrb[38].mxu0 }
 0x2f0   : > { %v3141_v44 = vpop.f32.mrb[39].mxu0 }
 0x2f1   : > { %v2518_v63 = vadd.f32 %v3096_v40, %v2453_v37  ;;  %v3142_v45 = vadd.f32 %v3141_v44, %v3140_v5  ;;  %v2580_v38 = vadd.f32 %v3133_v28, %v2515_v39 }
 0x2f3   : > { %v3097_v23 = vpop.f32.mrb[28].mxu1  ;;  %v2583_v41 = vadd.f32 %v3136_v31, %v2518_v63 }
 0x2f4   : > { %v3098_v46 = vpop.f32.mrb[29].mxu1 }
 0x2f5   : > { %v3099_v47 = vadd.f32 %v3098_v46, %v3097_v23  ;;  %v3100_v48 = vpop.f32.mrb[30].mxu1 }
 0x2f6   : > { %v3101_v52 = vpop.f32.mrb[31].mxu1 }
 0x2f7   : > { %v2523_v49 = vadd.f32 %v3099_v47, %v2458_v50  ;;  %v3102_v53 = vadd.f32 %v3101_v52, %v3100_v48 }
 0x2f9   : > { %v2526_v10 = vadd.f32 %v3102_v53, %v2461_v30  ;;  %v2628_v12 = vpop.f32.mrb[40].mxu0  ;;  %v2588_v3 = vadd.f32 %v3139_v22, %v2523_v49 }
 0x2fa   : > { %v2629_v13 = vadd.f32 %v2628_v12, %v2564_v7  ;;  %v2630_v15 = vpop.f32.mrb[41].mxu0 }
 0x2fb   : > { %v2631_v37 = vpop.f32.mrb[42].mxu0  ;;  %v2591_v14 = vadd.f32 %v3142_v45, %v2526_v10 }
 0x2fc   : > { %v2659_v51 = vmax.f32 %v2629_v13, 0.0  ;;  %v2632_v50 = vadd.f32 %v2631_v37, %v2567_v32  ;;  %v2633_v54 = vpop.f32.mrb[43].mxu0 }
 0x2fe   : > { %2667 = vst [vmem:[%s4117_s29] sm:$0xff] %v2659_v51  ;;  %v2660_v30 = vmax.f32 %v2632_v50, 0.0 }
 0x2ff   : > { %v2636_v17 = vpop.f32.mrb[32].mxu1 }
 0x300   : > { %2668 = vst [vmem:[%s4117_s29 + $0x8] sm:$0xff] %v2660_v30  ;;  %v2637_v18 = vadd.f32 %v2636_v17, %v2572_v4  ;;  %v2638_v21 = vpop.f32.mrb[33].mxu1 }
 0x301   : > { %v2639_v55 = vpop.f32.mrb[34].mxu1 }
 0x302   : > { %v2661_v56 = vmax.f32 %v2637_v18, 0.0  ;;  %v2640_v57 = vadd.f32 %v2639_v55, %v2575_v25  ;;  %v2641_v43 = vpop.f32.mrb[35].mxu1 }
 0x304   : > { %2669 = vst [vmem:[%s4117_s29 + $0x10] sm:$0xff] %v2661_v56  ;;  %v2662_v58 = vmax.f32 %v2640_v57, 0.0 }
 0x306   : > { %2670 = vst [vmem:[%s4117_s29 + $0x18] sm:$0xff] %v2662_v58 }
 0x307   : > { %v2644_v59 = vpop.f32.mrb[36].mxu1 }
 0x308   : > { %v2645_v60 = vadd.f32 %v2644_v59, %v2580_v38  ;;  %v2646_v61 = vpop.f32.mrb[37].mxu1 }
 0x309   : > { %v2647_v1 = vpop.f32.mrb[38].mxu1 }
 0x30a   : > { %v2663_v7 = vmax.f32 %v2645_v60, 0.0  ;;  %v2648_v6 = vadd.f32 %v2647_v1, %v2583_v41  ;;  %v2649_v32 = vpop.f32.mrb[39].mxu1 }
 0x30c   : > { %2671 = vst [vmem:[%s4117_s29 + $0x20] sm:$0xff] %v2663_v7  ;;  %v2664_v42 = vmax.f32 %v2648_v6, 0.0 }
 0x30e   : > { %2672 = vst [vmem:[%s4117_s29 + $0x28] sm:$0xff] %v2664_v42 }
 0x30f   : > { %v2652_v8 = vpop.f32.mrb[40].mxu1 }
 0x310   : > { %v2653_v20 = vadd.f32 %v2652_v8, %v2588_v3  ;;  %v2654_v9 = vpop.f32.mrb[41].mxu1 }
 0x311   : > { %v2655_v19 = vpop.f32.mrb[42].mxu1 }
 0x312   : > { %v2665_v24 = vmax.f32 %v2653_v20, 0.0  ;;  %v2656_v27 = vadd.f32 %v2655_v19, %v2591_v14  ;;  %v2657_v11 = vpop.f32.mrb[43].mxu1 }
 0x314   : > { %2673 = vst [vmem:[%s4117_s29 + $0x30] sm:$0xff] %v2665_v24  ;;  %v2666_v28 = vmax.f32 %v2656_v27, 0.0 }
 0x316   : > { %2674 = vst [vmem:[%s4117_s29 + $0x38] sm:$0xff] %v2666_v28 }
 0x317 PF: > { %s18_s27 = sadd.s32 1, %s3342_s27  }
 0x318   : > { %p15_p4 = scmp.ge.s32.totalorder %s18_s27, 4  }
 0x31a   :  { %17 = sbr.rel (!%p15_p4) target bundleno = 1 (0x1), region = 94 }

</bundles_post_ra>
